<compile_context>
chip_gen: v7x
topology: tpu7x:2x2x1
jax: 0.10.0
libtpu: 0.0.40
codegen_flags: <defaults>
</compile_context>

<pallas_src>
import functools

import jax
import jax.numpy as jnp
from jax.experimental import pallas as pl
from jax.experimental.pallas import tpu as pltpu


def _mhsa_kernel(x_ref, wqkv_ref, bqkv_ref, wo_ref, bo_ref, o_ref, *,
                 nhead, d_k, seq_len):
    H, dk, S = nhead, d_k, seq_len
    rows, D = x_ref.shape                     # rows = bb * S, D = d_model
    bb = rows // S                            # batches handled by this grid step

    # ---- fused, lane-dense QKV projection: one full-width MXU matmul -------
    # wqkv: (D, 3D) bf16, columns = [q | k | v], each with the (H, dk) head
    # split along columns; 1/sqrt(dk) is pre-folded into the q columns/bias.
    qkv = jnp.dot(x_ref[...], wqkv_ref[...],
                  preferred_element_type=jnp.float32)       # (bb*S, 3D) f32
    qkv = qkv + bqkv_ref[...]                                # (1, 3D) bias

    # ---- head split: static slices -> (bb*H, S, dk) attention batch --------
    q_p, k_p, v_p = [], [], []
    for b in range(bb):
        r0 = b * S
        for h in range(H):
            c = h * dk
            q_p.append(qkv[r0:r0 + S, c:c + dk])
            k_p.append(qkv[r0:r0 + S, D + c:D + c + dk])
            v_p.append(qkv[r0:r0 + S, 2 * D + c:2 * D + c + dk])
    q = jnp.stack(q_p).astype(jnp.bfloat16)                  # (bb*H, S, dk)
    k = jnp.stack(k_p).astype(jnp.bfloat16)
    v = jnp.stack(v_p).astype(jnp.bfloat16)

    # ---- all (batch, head) pairs' attention in two batched matmuls ---------
    scores = jax.lax.dot_general(
        q, k, (((2,), (2,)), ((0,), (0,))),
        preferred_element_type=jnp.float32)                  # (bb*H, S, S) f32

    # Numerically stable softmax (f32); normalization deferred past PV.
    m = jnp.max(scores, axis=-1, keepdims=True)
    p = jnp.exp(scores - m)
    l = jnp.sum(p, axis=-1, keepdims=True)                   # (bb*H, S, 1)

    ctx = jax.lax.dot_general(
        p.astype(jnp.bfloat16), v, (((2,), (1,)), ((0,), (0,))),
        preferred_element_type=jnp.float32)                  # (bb*H, S, dk) f32
    ctx = (ctx * pl.reciprocal(l, approx=True)).astype(jnp.bfloat16)

    # ---- output projection, head re-assembly folded into the contraction ---
    # out[b, i, :] = sum_h ctx[b, h, i, :] @ wo_h[h]          (no lane concat)
    wo_h = wo_ref[...]                                        # (H, dk, D) bf16
    out_rows = []
    for b in range(bb):
        part = jax.lax.dot_general(
            ctx[b * H:(b + 1) * H], wo_h, (((2,), (1,)), ((0,), (0,))),
            preferred_element_type=jnp.float32)               # (H, S, D) f32
        acc = part[0]
        for h in range(1, H):
            acc = acc + part[h]
        out_rows.append(acc)                                  # (S, D)
    out = out_rows[0] if bb == 1 else jnp.concatenate(out_rows, axis=0)
    out = out + bo_ref[...]                                    # (1, D) bias
    o_ref[...] = out.astype(o_ref.dtype)


def _dual_core_grid_steps(batch):
    """2 batch-block grid steps on dual-TensorCore chips (v7x), else 1."""
    try:
        kind = jax.devices()[0].device_kind.lower()
    except Exception:
        kind = ""
    two_cores = ("v7" in kind) or ("7x" in kind)
    return 2 if (two_cores and batch >= 2 and batch % 2 == 0) else 1


@functools.partial(jax.jit, static_argnames=("nhead", "grid_n"))
def _mhsa_call(x, wq, bq, wk, bk, wv, bv, wo, bo, *, nhead, grid_n):
    B, S, D = x.shape
    H = nhead
    d_k = D // H
    bb = B // grid_n                          # batches per grid step

    # Host-side repack (folded into XLA around the kernel):
    #  * lane-dense fused QKV weight (D, 3D) with 1/sqrt(d_k) folded into Wq/bq,
    #  * head-major out-proj weight (H, d_k, D),
    #  * bf16 MXU operands, f32 biases.
    scale = 1.0 / (float(d_k) ** 0.5)
    wqkv = jnp.concatenate([wq * scale, wk, wv], axis=1).astype(jnp.bfloat16)
    bqkv = jnp.concatenate([bq * scale, bk, bv], axis=1).astype(jnp.float32)
    wo_h = wo.reshape(H, d_k, D).astype(jnp.bfloat16)
    bo_f = bo.astype(jnp.float32)
    x2d = x.reshape(B * S, D).astype(jnp.bfloat16)

    kernel = functools.partial(_mhsa_kernel, nhead=H, d_k=d_k, seq_len=S)

    out2d = pl.pallas_call(
        kernel,
        out_shape=jax.ShapeDtypeStruct((B * S, D), jnp.float32),
        grid=(grid_n,),
        in_specs=[
            pl.BlockSpec((bb * S, D), lambda i: (i, 0)),       # x rows (bb batches)
            pl.BlockSpec((D, 3 * D), lambda i: (0, 0)),        # fused QKV weight
            pl.BlockSpec((1, 3 * D), lambda i: (0, 0)),        # fused QKV bias
            pl.BlockSpec((H, d_k, D), lambda i: (0, 0, 0)),    # out-proj weight
            pl.BlockSpec((1, D), lambda i: (0, 0)),            # out-proj bias
        ],
        out_specs=pl.BlockSpec((bb * S, D), lambda i: (i, 0)),
        compiler_params=pltpu.CompilerParams(
            dimension_semantics=("parallel",)),
    )(x2d, wqkv, bqkv, wo_h, bo_f)
    return out2d.reshape(B, S, D)


def multi_head_self_attention(x, wq, bq, wk, bk, wv, bv, wo, bo, *, nhead):
    # Whole batch in one kernel body on single-TC chips (v5e/v6e); a size-2
    # "parallel" batch-block grid axis on dual-TC v7x so both cores get work.
    grid_n = _dual_core_grid_steps(x.shape[0])
    return _mhsa_call(x, wq, bq, wk, bk, wv, bv, wo, bo,
                      nhead=nhead, grid_n=grid_n)


def _reference(x, wq, bq, wk, bk, wv, bv, wo, bo, nhead):
    # Pure-JAX (f32) mirror of the PyTorch forward (dropout = identity, no mask).
    B, S, D = x.shape
    d_k = D // nhead

    def proj(w, b):
        return (x @ w + b).reshape(B, S, nhead, d_k).transpose(0, 2, 1, 3)

    q, k, v = proj(wq, bq), proj(wk, bk), proj(wv, bv)
    scores = (q @ k.transpose(0, 1, 3, 2)) / jnp.sqrt(jnp.float32(d_k))
    attn = jax.nn.softmax(scores, axis=-1)
    ctx = (attn @ v).transpose(0, 2, 1, 3).reshape(B, S, D)
    return ctx @ wo + bo


if __name__ == "__main__":
    # Small shapes consistent with the module's forward:
    # batch=2, seq=16, d_model=128, nhead=8 -> d_k=16.
    B, S, D, H = 2, 16, 128, 8

    key = jax.random.PRNGKey(0)
    keys = jax.random.split(key, 9)
    init = 1.0 / jnp.sqrt(jnp.float32(D))

    x = jax.random.normal(keys[0], (B, S, D), dtype=jnp.float32)
    wq = jax.random.uniform(keys[1], (D, D), jnp.float32, -init, init)
    wk = jax.random.uniform(keys[2], (D, D), jnp.float32, -init, init)
    wv = jax.random.uniform(keys[3], (D, D), jnp.float32, -init, init)
    wo = jax.random.uniform(keys[4], (D, D), jnp.float32, -init, init)
    bq = jax.random.uniform(keys[5], (1, D), jnp.float32, -init, init)
    bk = jax.random.uniform(keys[6], (1, D), jnp.float32, -init, init)
    bv = jax.random.uniform(keys[7], (1, D), jnp.float32, -init, init)
    bo = jax.random.uniform(keys[8], (1, D), jnp.float32, -init, init)

    out = multi_head_self_attention(x, wq, bq, wk, bk, wv, bv, wo, bo, nhead=H)
    out = jax.block_until_ready(out)

    ref = _reference(x, wq, bq, wk, bk, wv, bv, wo, bo, H)
    assert out.shape == (B, S, D)
    # bf16 MXU operands / f32 accumulation + approx reciprocal: allow a few e-3.
    assert jnp.allclose(out, ref, atol=3e-2, rtol=3e-2), "mismatch vs JAX reference"

    print("KERNEL_OK")
</pallas_src>

<mosaic_0001>
module attributes {stable_mosaic.version = 11 : i64} {
  func.func @_mhsa_kernel(%arg0: i32, %arg1: memref<32x128xbf16, #tpu.memory_space<vmem>>, %arg2: memref<128x384xbf16, #tpu.memory_space<vmem>>, %arg3: memref<1x384xf32, #tpu.memory_space<vmem>>, %arg4: memref<8x16x128xbf16, #tpu.memory_space<vmem>>, %arg5: memref<1x128xf32, #tpu.memory_space<vmem>>, %arg6: memref<32x128xf32, #tpu.memory_space<vmem>>) attributes {dimension_semantics = [#tpu.dimension_semantics<parallel>], iteration_bounds = array<i64: 1>, scalar_prefetch = 0 : i64, scratch_operands = 0 : i64, tpu.core_type = #tpu.core_type<tc>, window_params = [{transform_indices = @transform_0, window_bounds = array<i64: 32, 128>}, {pipeline_mode = #tpu.pipeline_mode<synchronous>, transform_indices = @transform_1, window_bounds = array<i64: 128, 384>}, {pipeline_mode = #tpu.pipeline_mode<synchronous>, transform_indices = @transform_2, window_bounds = array<i64: 1, 384>}, {pipeline_mode = #tpu.pipeline_mode<synchronous>, transform_indices = @transform_3, window_bounds = array<i64: 8, 16, 128>}, {pipeline_mode = #tpu.pipeline_mode<synchronous>, transform_indices = @transform_4, window_bounds = array<i64: 1, 128>}, {transform_indices = @transform_5, window_bounds = array<i64: 32, 128>}]} {
    %c0 = arith.constant 0 : index
    %c0_0 = arith.constant 0 : index
    %0 = vector.load %arg1[%c0, %c0_0] : memref<32x128xbf16, #tpu.memory_space<vmem>>, vector<32x128xbf16>
    %c0_1 = arith.constant 0 : index
    %c0_2 = arith.constant 0 : index
    %1 = vector.load %arg2[%c0_1, %c0_2] : memref<128x384xbf16, #tpu.memory_space<vmem>>, vector<128x384xbf16>
    %cst = arith.constant dense<0.000000e+00> : vector<32x384xf32>
    %2 = tpu.matmul %0, %1, %cst {dimension_numbers = #tpu.dot_dimension_numbers<[1], [0], [0], [1], [0, 0, 1, 1], [], []>} : vector<32x128xbf16>, vector<128x384xbf16>, vector<32x384xf32> -> vector<32x384xf32>
    %c0_3 = arith.constant 0 : index
    %c0_4 = arith.constant 0 : index
    %3 = vector.load %arg3[%c0_3, %c0_4] : memref<1x384xf32, #tpu.memory_space<vmem>>, vector<1x384xf32>
    %4 = vector.broadcast %3 : vector<1x384xf32> to vector<32x384xf32>
    %5 = arith.addf %2, %4 : vector<32x384xf32>
    %6 = vector.extract_strided_slice %5 {offsets = [0, 0], sizes = [16, 16], strides = [1, 1]} : vector<32x384xf32> to vector<16x16xf32>
    %7 = vector.extract_strided_slice %5 {offsets = [0, 128], sizes = [16, 16], strides = [1, 1]} : vector<32x384xf32> to vector<16x16xf32>
    %8 = vector.extract_strided_slice %5 {offsets = [0, 256], sizes = [16, 16], strides = [1, 1]} : vector<32x384xf32> to vector<16x16xf32>
    %9 = vector.extract_strided_slice %5 {offsets = [0, 16], sizes = [16, 16], strides = [1, 1]} : vector<32x384xf32> to vector<16x16xf32>
    %10 = vector.extract_strided_slice %5 {offsets = [0, 144], sizes = [16, 16], strides = [1, 1]} : vector<32x384xf32> to vector<16x16xf32>
    %11 = vector.extract_strided_slice %5 {offsets = [0, 272], sizes = [16, 16], strides = [1, 1]} : vector<32x384xf32> to vector<16x16xf32>
    %12 = vector.extract_strided_slice %5 {offsets = [0, 32], sizes = [16, 16], strides = [1, 1]} : vector<32x384xf32> to vector<16x16xf32>
    %13 = vector.extract_strided_slice %5 {offsets = [0, 160], sizes = [16, 16], strides = [1, 1]} : vector<32x384xf32> to vector<16x16xf32>
    %14 = vector.extract_strided_slice %5 {offsets = [0, 288], sizes = [16, 16], strides = [1, 1]} : vector<32x384xf32> to vector<16x16xf32>
    %15 = vector.extract_strided_slice %5 {offsets = [0, 48], sizes = [16, 16], strides = [1, 1]} : vector<32x384xf32> to vector<16x16xf32>
    %16 = vector.extract_strided_slice %5 {offsets = [0, 176], sizes = [16, 16], strides = [1, 1]} : vector<32x384xf32> to vector<16x16xf32>
    %17 = vector.extract_strided_slice %5 {offsets = [0, 304], sizes = [16, 16], strides = [1, 1]} : vector<32x384xf32> to vector<16x16xf32>
    %18 = vector.extract_strided_slice %5 {offsets = [0, 64], sizes = [16, 16], strides = [1, 1]} : vector<32x384xf32> to vector<16x16xf32>
    %19 = vector.extract_strided_slice %5 {offsets = [0, 192], sizes = [16, 16], strides = [1, 1]} : vector<32x384xf32> to vector<16x16xf32>
    %20 = vector.extract_strided_slice %5 {offsets = [0, 320], sizes = [16, 16], strides = [1, 1]} : vector<32x384xf32> to vector<16x16xf32>
    %21 = vector.extract_strided_slice %5 {offsets = [0, 80], sizes = [16, 16], strides = [1, 1]} : vector<32x384xf32> to vector<16x16xf32>
    %22 = vector.extract_strided_slice %5 {offsets = [0, 208], sizes = [16, 16], strides = [1, 1]} : vector<32x384xf32> to vector<16x16xf32>
    %23 = vector.extract_strided_slice %5 {offsets = [0, 336], sizes = [16, 16], strides = [1, 1]} : vector<32x384xf32> to vector<16x16xf32>
    %24 = vector.extract_strided_slice %5 {offsets = [0, 96], sizes = [16, 16], strides = [1, 1]} : vector<32x384xf32> to vector<16x16xf32>
    %25 = vector.extract_strided_slice %5 {offsets = [0, 224], sizes = [16, 16], strides = [1, 1]} : vector<32x384xf32> to vector<16x16xf32>
    %26 = vector.extract_strided_slice %5 {offsets = [0, 352], sizes = [16, 16], strides = [1, 1]} : vector<32x384xf32> to vector<16x16xf32>
    %27 = vector.extract_strided_slice %5 {offsets = [0, 112], sizes = [16, 16], strides = [1, 1]} : vector<32x384xf32> to vector<16x16xf32>
    %28 = vector.extract_strided_slice %5 {offsets = [0, 240], sizes = [16, 16], strides = [1, 1]} : vector<32x384xf32> to vector<16x16xf32>
    %29 = vector.extract_strided_slice %5 {offsets = [0, 368], sizes = [16, 16], strides = [1, 1]} : vector<32x384xf32> to vector<16x16xf32>
    %30 = vector.extract_strided_slice %5 {offsets = [16, 0], sizes = [16, 16], strides = [1, 1]} : vector<32x384xf32> to vector<16x16xf32>
    %31 = vector.extract_strided_slice %5 {offsets = [16, 128], sizes = [16, 16], strides = [1, 1]} : vector<32x384xf32> to vector<16x16xf32>
    %32 = vector.extract_strided_slice %5 {offsets = [16, 256], sizes = [16, 16], strides = [1, 1]} : vector<32x384xf32> to vector<16x16xf32>
    %33 = vector.extract_strided_slice %5 {offsets = [16, 16], sizes = [16, 16], strides = [1, 1]} : vector<32x384xf32> to vector<16x16xf32>
    %34 = vector.extract_strided_slice %5 {offsets = [16, 144], sizes = [16, 16], strides = [1, 1]} : vector<32x384xf32> to vector<16x16xf32>
    %35 = vector.extract_strided_slice %5 {offsets = [16, 272], sizes = [16, 16], strides = [1, 1]} : vector<32x384xf32> to vector<16x16xf32>
    %36 = vector.extract_strided_slice %5 {offsets = [16, 32], sizes = [16, 16], strides = [1, 1]} : vector<32x384xf32> to vector<16x16xf32>
    %37 = vector.extract_strided_slice %5 {offsets = [16, 160], sizes = [16, 16], strides = [1, 1]} : vector<32x384xf32> to vector<16x16xf32>
    %38 = vector.extract_strided_slice %5 {offsets = [16, 288], sizes = [16, 16], strides = [1, 1]} : vector<32x384xf32> to vector<16x16xf32>
    %39 = vector.extract_strided_slice %5 {offsets = [16, 48], sizes = [16, 16], strides = [1, 1]} : vector<32x384xf32> to vector<16x16xf32>
    %40 = vector.extract_strided_slice %5 {offsets = [16, 176], sizes = [16, 16], strides = [1, 1]} : vector<32x384xf32> to vector<16x16xf32>
    %41 = vector.extract_strided_slice %5 {offsets = [16, 304], sizes = [16, 16], strides = [1, 1]} : vector<32x384xf32> to vector<16x16xf32>
    %42 = vector.extract_strided_slice %5 {offsets = [16, 64], sizes = [16, 16], strides = [1, 1]} : vector<32x384xf32> to vector<16x16xf32>
    %43 = vector.extract_strided_slice %5 {offsets = [16, 192], sizes = [16, 16], strides = [1, 1]} : vector<32x384xf32> to vector<16x16xf32>
    %44 = vector.extract_strided_slice %5 {offsets = [16, 320], sizes = [16, 16], strides = [1, 1]} : vector<32x384xf32> to vector<16x16xf32>
    %45 = vector.extract_strided_slice %5 {offsets = [16, 80], sizes = [16, 16], strides = [1, 1]} : vector<32x384xf32> to vector<16x16xf32>
    %46 = vector.extract_strided_slice %5 {offsets = [16, 208], sizes = [16, 16], strides = [1, 1]} : vector<32x384xf32> to vector<16x16xf32>
    %47 = vector.extract_strided_slice %5 {offsets = [16, 336], sizes = [16, 16], strides = [1, 1]} : vector<32x384xf32> to vector<16x16xf32>
    %48 = vector.extract_strided_slice %5 {offsets = [16, 96], sizes = [16, 16], strides = [1, 1]} : vector<32x384xf32> to vector<16x16xf32>
    %49 = vector.extract_strided_slice %5 {offsets = [16, 224], sizes = [16, 16], strides = [1, 1]} : vector<32x384xf32> to vector<16x16xf32>
    %50 = vector.extract_strided_slice %5 {offsets = [16, 352], sizes = [16, 16], strides = [1, 1]} : vector<32x384xf32> to vector<16x16xf32>
    %51 = vector.extract_strided_slice %5 {offsets = [16, 112], sizes = [16, 16], strides = [1, 1]} : vector<32x384xf32> to vector<16x16xf32>
    %52 = vector.extract_strided_slice %5 {offsets = [16, 240], sizes = [16, 16], strides = [1, 1]} : vector<32x384xf32> to vector<16x16xf32>
    %53 = vector.extract_strided_slice %5 {offsets = [16, 368], sizes = [16, 16], strides = [1, 1]} : vector<32x384xf32> to vector<16x16xf32>
    %54 = vector.shape_cast %6 : vector<16x16xf32> to vector<1x16x16xf32>
    %55 = vector.shape_cast %9 : vector<16x16xf32> to vector<1x16x16xf32>
    %56 = vector.shape_cast %12 : vector<16x16xf32> to vector<1x16x16xf32>
    %57 = vector.shape_cast %15 : vector<16x16xf32> to vector<1x16x16xf32>
    %58 = vector.shape_cast %18 : vector<16x16xf32> to vector<1x16x16xf32>
    %59 = vector.shape_cast %21 : vector<16x16xf32> to vector<1x16x16xf32>
    %60 = vector.shape_cast %24 : vector<16x16xf32> to vector<1x16x16xf32>
    %61 = vector.shape_cast %27 : vector<16x16xf32> to vector<1x16x16xf32>
    %62 = vector.shape_cast %30 : vector<16x16xf32> to vector<1x16x16xf32>
    %63 = vector.shape_cast %33 : vector<16x16xf32> to vector<1x16x16xf32>
    %64 = vector.shape_cast %36 : vector<16x16xf32> to vector<1x16x16xf32>
    %65 = vector.shape_cast %39 : vector<16x16xf32> to vector<1x16x16xf32>
    %66 = vector.shape_cast %42 : vector<16x16xf32> to vector<1x16x16xf32>
    %67 = vector.shape_cast %45 : vector<16x16xf32> to vector<1x16x16xf32>
    %68 = vector.shape_cast %48 : vector<16x16xf32> to vector<1x16x16xf32>
    %69 = vector.shape_cast %51 : vector<16x16xf32> to vector<1x16x16xf32>
    %70 = tpu.concatenate %54, %55, %56, %57, %58, %59, %60, %61, %62, %63, %64, %65, %66, %67, %68, %69 in 0 : vector<1x16x16xf32>, vector<1x16x16xf32>, vector<1x16x16xf32>, vector<1x16x16xf32>, vector<1x16x16xf32>, vector<1x16x16xf32>, vector<1x16x16xf32>, vector<1x16x16xf32>, vector<1x16x16xf32>, vector<1x16x16xf32>, vector<1x16x16xf32>, vector<1x16x16xf32>, vector<1x16x16xf32>, vector<1x16x16xf32>, vector<1x16x16xf32>, vector<1x16x16xf32> -> vector<16x16x16xf32>
    %71 = arith.truncf %70 : vector<16x16x16xf32> to vector<16x16x16xbf16>
    %72 = vector.shape_cast %7 : vector<16x16xf32> to vector<1x16x16xf32>
    %73 = vector.shape_cast %10 : vector<16x16xf32> to vector<1x16x16xf32>
    %74 = vector.shape_cast %13 : vector<16x16xf32> to vector<1x16x16xf32>
    %75 = vector.shape_cast %16 : vector<16x16xf32> to vector<1x16x16xf32>
    %76 = vector.shape_cast %19 : vector<16x16xf32> to vector<1x16x16xf32>
    %77 = vector.shape_cast %22 : vector<16x16xf32> to vector<1x16x16xf32>
    %78 = vector.shape_cast %25 : vector<16x16xf32> to vector<1x16x16xf32>
    %79 = vector.shape_cast %28 : vector<16x16xf32> to vector<1x16x16xf32>
    %80 = vector.shape_cast %31 : vector<16x16xf32> to vector<1x16x16xf32>
    %81 = vector.shape_cast %34 : vector<16x16xf32> to vector<1x16x16xf32>
    %82 = vector.shape_cast %37 : vector<16x16xf32> to vector<1x16x16xf32>
    %83 = vector.shape_cast %40 : vector<16x16xf32> to vector<1x16x16xf32>
    %84 = vector.shape_cast %43 : vector<16x16xf32> to vector<1x16x16xf32>
    %85 = vector.shape_cast %46 : vector<16x16xf32> to vector<1x16x16xf32>
    %86 = vector.shape_cast %49 : vector<16x16xf32> to vector<1x16x16xf32>
    %87 = vector.shape_cast %52 : vector<16x16xf32> to vector<1x16x16xf32>
    %88 = tpu.concatenate %72, %73, %74, %75, %76, %77, %78, %79, %80, %81, %82, %83, %84, %85, %86, %87 in 0 : vector<1x16x16xf32>, vector<1x16x16xf32>, vector<1x16x16xf32>, vector<1x16x16xf32>, vector<1x16x16xf32>, vector<1x16x16xf32>, vector<1x16x16xf32>, vector<1x16x16xf32>, vector<1x16x16xf32>, vector<1x16x16xf32>, vector<1x16x16xf32>, vector<1x16x16xf32>, vector<1x16x16xf32>, vector<1x16x16xf32>, vector<1x16x16xf32>, vector<1x16x16xf32> -> vector<16x16x16xf32>
    %89 = arith.truncf %88 : vector<16x16x16xf32> to vector<16x16x16xbf16>
    %90 = vector.shape_cast %8 : vector<16x16xf32> to vector<1x16x16xf32>
    %91 = vector.shape_cast %11 : vector<16x16xf32> to vector<1x16x16xf32>
    %92 = vector.shape_cast %14 : vector<16x16xf32> to vector<1x16x16xf32>
    %93 = vector.shape_cast %17 : vector<16x16xf32> to vector<1x16x16xf32>
    %94 = vector.shape_cast %20 : vector<16x16xf32> to vector<1x16x16xf32>
    %95 = vector.shape_cast %23 : vector<16x16xf32> to vector<1x16x16xf32>
    %96 = vector.shape_cast %26 : vector<16x16xf32> to vector<1x16x16xf32>
    %97 = vector.shape_cast %29 : vector<16x16xf32> to vector<1x16x16xf32>
    %98 = vector.shape_cast %32 : vector<16x16xf32> to vector<1x16x16xf32>
    %99 = vector.shape_cast %35 : vector<16x16xf32> to vector<1x16x16xf32>
    %100 = vector.shape_cast %38 : vector<16x16xf32> to vector<1x16x16xf32>
    %101 = vector.shape_cast %41 : vector<16x16xf32> to vector<1x16x16xf32>
    %102 = vector.shape_cast %44 : vector<16x16xf32> to vector<1x16x16xf32>
    %103 = vector.shape_cast %47 : vector<16x16xf32> to vector<1x16x16xf32>
    %104 = vector.shape_cast %50 : vector<16x16xf32> to vector<1x16x16xf32>
    %105 = vector.shape_cast %53 : vector<16x16xf32> to vector<1x16x16xf32>
    %106 = tpu.concatenate %90, %91, %92, %93, %94, %95, %96, %97, %98, %99, %100, %101, %102, %103, %104, %105 in 0 : vector<1x16x16xf32>, vector<1x16x16xf32>, vector<1x16x16xf32>, vector<1x16x16xf32>, vector<1x16x16xf32>, vector<1x16x16xf32>, vector<1x16x16xf32>, vector<1x16x16xf32>, vector<1x16x16xf32>, vector<1x16x16xf32>, vector<1x16x16xf32>, vector<1x16x16xf32>, vector<1x16x16xf32>, vector<1x16x16xf32>, vector<1x16x16xf32>, vector<1x16x16xf32> -> vector<16x16x16xf32>
    %107 = arith.truncf %106 : vector<16x16x16xf32> to vector<16x16x16xbf16>
    %cst_5 = arith.constant dense<0.000000e+00> : vector<16x16x16xf32>
    %108 = tpu.matmul %71, %89, %cst_5 {dimension_numbers = #tpu.dot_dimension_numbers<[2], [2], [1], [1], [0, 0, 0, 1, 1, 1], [0], [0]>} : vector<16x16x16xbf16>, vector<16x16x16xbf16>, vector<16x16x16xf32> -> vector<16x16x16xf32>
    %cst_6 = arith.constant dense<0xFF800000> : vector<16x16xf32>
    %109 = vector.multi_reduction <maximumf>, %108, %cst_6 [2] : vector<16x16x16xf32> to vector<16x16xf32>
    %110 = vector.shape_cast %109 : vector<16x16xf32> to vector<16x16x1xf32>
    %111 = vector.broadcast %110 : vector<16x16x1xf32> to vector<16x16x16xf32>
    %112 = arith.subf %108, %111 : vector<16x16x16xf32>
    %113 = math.exp %112 : vector<16x16x16xf32>
    %cst_7 = arith.constant dense<0.000000e+00> : vector<16x16xf32>
    %114 = vector.multi_reduction <add>, %113, %cst_7 [2] : vector<16x16x16xf32> to vector<16x16xf32>
    %115 = vector.shape_cast %114 : vector<16x16xf32> to vector<16x16x1xf32>
    %116 = arith.truncf %113 : vector<16x16x16xf32> to vector<16x16x16xbf16>
    %cst_8 = arith.constant dense<0.000000e+00> : vector<16x16x16xf32>
    %117 = tpu.matmul %116, %107, %cst_8 {dimension_numbers = #tpu.dot_dimension_numbers<[2], [1], [1], [2], [0, 0, 0, 1, 1, 2], [0], [0]>} : vector<16x16x16xbf16>, vector<16x16x16xbf16>, vector<16x16x16xf32> -> vector<16x16x16xf32>
    %118 = tpu.reciprocal %115 {approx = true} : vector<16x16x1xf32> -> vector<16x16x1xf32>
    %119 = vector.broadcast %118 : vector<16x16x1xf32> to vector<16x16x16xf32>
    %120 = arith.mulf %117, %119 : vector<16x16x16xf32>
    %121 = arith.truncf %120 : vector<16x16x16xf32> to vector<16x16x16xbf16>
    %c0_9 = arith.constant 0 : index
    %c0_10 = arith.constant 0 : index
    %c0_11 = arith.constant 0 : index
    %122 = vector.load %arg4[%c0_9, %c0_10, %c0_11] : memref<8x16x128xbf16, #tpu.memory_space<vmem>>, vector<8x16x128xbf16>
    %123 = vector.extract_strided_slice %121 {offsets = [0, 0, 0], sizes = [8, 16, 16], strides = [1, 1, 1]} : vector<16x16x16xbf16> to vector<8x16x16xbf16>
    %cst_12 = arith.constant dense<0.000000e+00> : vector<8x16x128xf32>
    %124 = tpu.matmul %123, %122, %cst_12 {dimension_numbers = #tpu.dot_dimension_numbers<[2], [1], [1], [2], [0, 0, 0, 1, 1, 2], [0], [0]>} : vector<8x16x16xbf16>, vector<8x16x128xbf16>, vector<8x16x128xf32> -> vector<8x16x128xf32>
    %125 = vector.extract_strided_slice %124 {offsets = [0, 0, 0], sizes = [1, 16, 128], strides = [1, 1, 1]} : vector<8x16x128xf32> to vector<1x16x128xf32>
    %126 = vector.shape_cast %125 : vector<1x16x128xf32> to vector<16x128xf32>
    %127 = vector.extract_strided_slice %124 {offsets = [1, 0, 0], sizes = [1, 16, 128], strides = [1, 1, 1]} : vector<8x16x128xf32> to vector<1x16x128xf32>
    %128 = vector.shape_cast %127 : vector<1x16x128xf32> to vector<16x128xf32>
    %129 = arith.addf %126, %128 : vector<16x128xf32>
    %130 = vector.extract_strided_slice %124 {offsets = [2, 0, 0], sizes = [1, 16, 128], strides = [1, 1, 1]} : vector<8x16x128xf32> to vector<1x16x128xf32>
    %131 = vector.shape_cast %130 : vector<1x16x128xf32> to vector<16x128xf32>
    %132 = arith.addf %129, %131 : vector<16x128xf32>
    %133 = vector.extract_strided_slice %124 {offsets = [3, 0, 0], sizes = [1, 16, 128], strides = [1, 1, 1]} : vector<8x16x128xf32> to vector<1x16x128xf32>
    %134 = vector.shape_cast %133 : vector<1x16x128xf32> to vector<16x128xf32>
    %135 = arith.addf %132, %134 : vector<16x128xf32>
    %136 = vector.extract_strided_slice %124 {offsets = [4, 0, 0], sizes = [1, 16, 128], strides = [1, 1, 1]} : vector<8x16x128xf32> to vector<1x16x128xf32>
    %137 = vector.shape_cast %136 : vector<1x16x128xf32> to vector<16x128xf32>
    %138 = arith.addf %135, %137 : vector<16x128xf32>
    %139 = vector.extract_strided_slice %124 {offsets = [5, 0, 0], sizes = [1, 16, 128], strides = [1, 1, 1]} : vector<8x16x128xf32> to vector<1x16x128xf32>
    %140 = vector.shape_cast %139 : vector<1x16x128xf32> to vector<16x128xf32>
    %141 = arith.addf %138, %140 : vector<16x128xf32>
    %142 = vector.extract_strided_slice %124 {offsets = [6, 0, 0], sizes = [1, 16, 128], strides = [1, 1, 1]} : vector<8x16x128xf32> to vector<1x16x128xf32>
    %143 = vector.shape_cast %142 : vector<1x16x128xf32> to vector<16x128xf32>
    %144 = arith.addf %141, %143 : vector<16x128xf32>
    %145 = vector.extract_strided_slice %124 {offsets = [7, 0, 0], sizes = [1, 16, 128], strides = [1, 1, 1]} : vector<8x16x128xf32> to vector<1x16x128xf32>
    %146 = vector.shape_cast %145 : vector<1x16x128xf32> to vector<16x128xf32>
    %147 = arith.addf %144, %146 : vector<16x128xf32>
    %148 = vector.extract_strided_slice %121 {offsets = [8, 0, 0], sizes = [8, 16, 16], strides = [1, 1, 1]} : vector<16x16x16xbf16> to vector<8x16x16xbf16>
    %cst_13 = arith.constant dense<0.000000e+00> : vector<8x16x128xf32>
    %149 = tpu.matmul %148, %122, %cst_13 {dimension_numbers = #tpu.dot_dimension_numbers<[2], [1], [1], [2], [0, 0, 0, 1, 1, 2], [0], [0]>} : vector<8x16x16xbf16>, vector<8x16x128xbf16>, vector<8x16x128xf32> -> vector<8x16x128xf32>
    %150 = vector.extract_strided_slice %149 {offsets = [0, 0, 0], sizes = [1, 16, 128], strides = [1, 1, 1]} : vector<8x16x128xf32> to vector<1x16x128xf32>
    %151 = vector.shape_cast %150 : vector<1x16x128xf32> to vector<16x128xf32>
    %152 = vector.extract_strided_slice %149 {offsets = [1, 0, 0], sizes = [1, 16, 128], strides = [1, 1, 1]} : vector<8x16x128xf32> to vector<1x16x128xf32>
    %153 = vector.shape_cast %152 : vector<1x16x128xf32> to vector<16x128xf32>
    %154 = arith.addf %151, %153 : vector<16x128xf32>
    %155 = vector.extract_strided_slice %149 {offsets = [2, 0, 0], sizes = [1, 16, 128], strides = [1, 1, 1]} : vector<8x16x128xf32> to vector<1x16x128xf32>
    %156 = vector.shape_cast %155 : vector<1x16x128xf32> to vector<16x128xf32>
    %157 = arith.addf %154, %156 : vector<16x128xf32>
    %158 = vector.extract_strided_slice %149 {offsets = [3, 0, 0], sizes = [1, 16, 128], strides = [1, 1, 1]} : vector<8x16x128xf32> to vector<1x16x128xf32>
    %159 = vector.shape_cast %158 : vector<1x16x128xf32> to vector<16x128xf32>
    %160 = arith.addf %157, %159 : vector<16x128xf32>
    %161 = vector.extract_strided_slice %149 {offsets = [4, 0, 0], sizes = [1, 16, 128], strides = [1, 1, 1]} : vector<8x16x128xf32> to vector<1x16x128xf32>
    %162 = vector.shape_cast %161 : vector<1x16x128xf32> to vector<16x128xf32>
    %163 = arith.addf %160, %162 : vector<16x128xf32>
    %164 = vector.extract_strided_slice %149 {offsets = [5, 0, 0], sizes = [1, 16, 128], strides = [1, 1, 1]} : vector<8x16x128xf32> to vector<1x16x128xf32>
    %165 = vector.shape_cast %164 : vector<1x16x128xf32> to vector<16x128xf32>
    %166 = arith.addf %163, %165 : vector<16x128xf32>
    %167 = vector.extract_strided_slice %149 {offsets = [6, 0, 0], sizes = [1, 16, 128], strides = [1, 1, 1]} : vector<8x16x128xf32> to vector<1x16x128xf32>
    %168 = vector.shape_cast %167 : vector<1x16x128xf32> to vector<16x128xf32>
    %169 = arith.addf %166, %168 : vector<16x128xf32>
    %170 = vector.extract_strided_slice %149 {offsets = [7, 0, 0], sizes = [1, 16, 128], strides = [1, 1, 1]} : vector<8x16x128xf32> to vector<1x16x128xf32>
    %171 = vector.shape_cast %170 : vector<1x16x128xf32> to vector<16x128xf32>
    %172 = arith.addf %169, %171 : vector<16x128xf32>
    %173 = tpu.concatenate %147, %172 in 0 : vector<16x128xf32>, vector<16x128xf32> -> vector<32x128xf32>
    %c0_14 = arith.constant 0 : index
    %c0_15 = arith.constant 0 : index
    %174 = vector.load %arg5[%c0_14, %c0_15] : memref<1x128xf32, #tpu.memory_space<vmem>>, vector<1x128xf32>
    %175 = vector.broadcast %174 : vector<1x128xf32> to vector<32x128xf32>
    %176 = arith.addf %173, %175 : vector<32x128xf32>
    %c0_16 = arith.constant 0 : index
    %c0_17 = arith.constant 0 : index
    %177 = vector.load %arg6[%c0_16, %c0_17] : memref<32x128xf32, #tpu.memory_space<vmem>>, vector<32x128xf32>
    tpu.vector_store %arg6[%c0_16, %c0_17], %176 {strides = array<i32>} : memref<32x128xf32, #tpu.memory_space<vmem>>, vector<32x128xf32>,
    return
  }
  func.func @transform_0(%arg0: i32) -> (i32, i32) {
    %c0_i32 = arith.constant 0 : i32
    %c0_i32_0 = arith.constant 0 : i32
    return %arg0, %c0_i32 : i32, i32
  }
  func.func @transform_1(%arg0: i32) -> (i32, i32) {
    %c0_i32 = arith.constant 0 : i32
    %c0_i32_0 = arith.constant 0 : i32
    %c0_i32_1 = arith.constant 0 : i32
    return %c0_i32, %c0_i32_0 : i32, i32
  }
  func.func @transform_2(%arg0: i32) -> (i32, i32) {
    %c0_i32 = arith.constant 0 : i32
    %c0_i32_0 = arith.constant 0 : i32
    %c0_i32_1 = arith.constant 0 : i32
    return %c0_i32, %c0_i32_0 : i32, i32
  }
  func.func @transform_3(%arg0: i32) -> (i32, i32, i32) {
    %c0_i32 = arith.constant 0 : i32
    %c0_i32_0 = arith.constant 0 : i32
    %c0_i32_1 = arith.constant 0 : i32
    %c0_i32_2 = arith.constant 0 : i32
    return %c0_i32, %c0_i32_0, %c0_i32_1 : i32, i32, i32
  }
  func.func @transform_4(%arg0: i32) -> (i32, i32) {
    %c0_i32 = arith.constant 0 : i32
    %c0_i32_0 = arith.constant 0 : i32
    %c0_i32_1 = arith.constant 0 : i32
    return %c0_i32, %c0_i32_0 : i32, i32
  }
  func.func @transform_5(%arg0: i32) -> (i32, i32) {
    %c0_i32 = arith.constant 0 : i32
    %c0_i32_0 = arith.constant 0 : i32
    return %arg0, %c0_i32 : i32, i32
  }
}

</mosaic_0001>

<bundles_post_ra>
// kernel: _mhsa_call.1
= control target key start
LH: loop header
LB: loop body
LE: loop exit
PB: predicated region body
PF: predicated region fallthrough
CT: control target
= control target key end

     0   :  { %v4211_v2 = vmov 0   ;;  %s4946_s0 = inlined_call_operand.vmem [shape: bf16[32,128], index: 0, kind: input, shape index: {}]   ;;  %s4947_s1 = inlined_call_operand.vmem [shape: bf16[128,384], index: 1, kind: input, shape index: {}]   ;;  %s4948_s2 = inlined_call_operand.vmem [shape: f32[1,384], index: 2, kind: input, shape index: {}]   ;;  %s4949_s3 = inlined_call_operand.vmem [shape: bf16[8,16,128], index: 3, kind: input, shape index: {}]   ;;  %s4950_s4 = inlined_call_operand.vmem [shape: f32[1,128], index: 4, kind: input, shape index: {}]   ;;  %s4951_s5 = inlined_call_operand.hbm [shape: f32[32,128], index: 5, kind: output, shape index: {}]  }
   0x1   :  { %v4017_v0 = vld [vmem:[%s4947_s1 + $0x4] ss:$12 sps:$4 sm:$0xff]   ;;  %v4019_v1 = vld [vmem:[%s4947_s1] ss:$12 sps:$4 sm:$0xff]   ;;  %247 = vmatprep.mubr.bf16.mxu0 %v4211_v2  ;;  %v4020_v3 = vld [vmem:[%s4947_s1 + $0x1c] ss:$12 sps:$4 sm:$0xff]  }
   0x2   :  { %215 = vmatprep.subr.bf16.mxu0 %v4017_v0  ;;  %v4022_v4 = vld [vmem:[%s4947_s1 + $0x18] ss:$12 sps:$4 sm:$0xff]   ;;  %v4023_v5 = vld [vmem:[%s4947_s1 + $0x34] ss:$12 sps:$4 sm:$0xff]   ;;  %v4025_v6 = vld [vmem:[%s4947_s1 + $0x30] ss:$12 sps:$4 sm:$0xff]  }
   0x3   :  { %216 = vmatpush1.bf16.msra.mxu0 %v4019_v1  ;;  %v4026_v7 = vld [vmem:[%s4947_s1 + $0x4c] ss:$12 sps:$4 sm:$0xff]   ;;  %v4028_v8 = vld [vmem:[%s4947_s1 + $0x48] ss:$12 sps:$4 sm:$0xff]   ;;  %v4041_v9 = vld [vmem:[%s4946_s0] sm:$0xff]  }
   0x4   :  { %217 = vmatprep.subr.bf16.mxu0 %v4020_v3  ;;  %v4029_v10 = vld [vmem:[%s4947_s1 + $0x64] ss:$12 sps:$4 sm:$0xff]   ;;  %v4043_v11 = vld [vmem:[%s4947_s1 + $0x8] ss:$12 sps:$4 sm:$0xff]   ;;  %3502 = vmatprep.mubr.bf16.mxu1 %v4041_v9  ;;  %v4044_v12 = vld [vmem:[%s4947_s1 + $0x20] ss:$12 sps:$4 sm:$0xff]  }
   0x5   :  { %v4031_v13 = vld [vmem:[%s4947_s1 + $0x60] ss:$12 sps:$4 sm:$0xff]   ;;  %3486 = vmatprep.subr.bf16.mxu1 %v4043_v11  ;;  %v4032_v14 = vld [vmem:[%s4947_s1 + $0x7c] ss:$12 sps:$4 sm:$0xff]   ;;  %v4045_v15 = vld [vmem:[%s4947_s1 + $0x38] ss:$12 sps:$4 sm:$0xff]  }
   0x6   :  { %3487 = vmatpush3.bf16.msra.mxu1 %v4043_v11  ;;  %v4034_v16 = vld [vmem:[%s4947_s1 + $0x78] ss:$12 sps:$4 sm:$0xff]   ;;  %v4035_v17 = vld [vmem:[%s4947_s1 + $0x94] ss:$12 sps:$4 sm:$0xff]   ;;  %v4046_v18 = vld [vmem:[%s4947_s1 + $0x50] ss:$12 sps:$4 sm:$0xff]  }
   0x7   :  { %218 = vmatpush1.bf16.msra.mxu0 %v4022_v4  ;;  %3488 = vmatprep.subr.bf16.mxu1 %v4044_v12  ;;  %v4037_v19 = vld [vmem:[%s4947_s1 + $0x90] ss:$12 sps:$4 sm:$0xff]   ;;  %v4038_v20 = vld [vmem:[%s4947_s1 + $0xac] ss:$12 sps:$4 sm:$0xff]   ;;  %v4047_v21 = vld [vmem:[%s4947_s1 + $0x68] ss:$12 sps:$4 sm:$0xff]  }
   0x8   :  { %219 = vmatprep.subr.bf16.mxu0 %v4023_v5 }
   0xa   :  { %3489 = vmatpush3.bf16.msra.mxu1 %v4044_v12 }
   0xb   :  { %220 = vmatpush1.bf16.msra.mxu0 %v4025_v6  ;;  %3490 = vmatprep.subr.bf16.mxu1 %v4045_v15 }
   0xc   :  { %221 = vmatprep.subr.bf16.mxu0 %v4026_v7 }
   0xe   :  { %3491 = vmatpush3.bf16.msra.mxu1 %v4045_v15 }
   0xf   :  { %222 = vmatpush1.bf16.msra.mxu0 %v4028_v8  ;;  %3492 = vmatprep.subr.bf16.mxu1 %v4046_v18 }
  0x10   :  { %223 = vmatprep.subr.bf16.mxu0 %v4029_v10 }
  0x13   :  { %224 = vmatpush1.bf16.msra.mxu0 %v4031_v13 }
  0x14   :  { %225 = vmatprep.subr.bf16.mxu0 %v4032_v14 }
  0x17   :  { %226 = vmatpush1.bf16.msra.mxu0 %v4034_v16 }
  0x18   :  { %227 = vmatprep.subr.bf16.mxu0 %v4035_v17 }
  0x19   :  { %10 = vsyncpa [#allocation3], 0  ;;  %v4040_v22 = vld [vmem:[%s4947_s1 + $0xa8] ss:$12 sps:$4 sm:$0xff]   ;;  %3493 = vmatpush3.bf16.msra.mxu1 %v4046_v18  ;;  %v4048_v23 = vld [vmem:[%s4947_s1 + $0x80] ss:$12 sps:$4 sm:$0xff]   ;;  %v60_v28 = vlaneseq }
  0x1a   :  { %3494 = vmatprep.subr.bf16.mxu1 %v4047_v21  ;;  %v4049_v24 = vld [vmem:[%s4947_s1 + $0x98] ss:$12 sps:$4 sm:$0xff]   ;;  %v4050_v25 = vld [vmem:[%s4947_s1 + $0xb0] ss:$12 sps:$4 sm:$0xff]   ;;  %v4042_v26 = vld [vmem:[%s4946_s0 + $0x8] sm:$0xff]   ;;  %v4212_v27 = vmov 0.0  }
  0x1b   :  { %228 = vmatpush1.bf16.msra.mxu0 %v4037_v19  ;;  %vm4213_vm0 = vmmov 0   ;;  %v61_v29 = vshrl.u32 %v60_v28, 7  ;;  %v58_v31 = vld [vmem:[%s4948_s2] sm:$0x7]  ;;  %vm629_vm1 = vcmask 130048   ;;  %s4214_s20 = smov 112  }
  0x1c   :  { %229 = vmatprep.subr.bf16.mxu0 %v4038_v20  ;;  %s4215_s2 = smov 80   ;;  %s4216_s21 = smov 96  }
  0x1d   :  { %3495 = vmatpush3.bf16.msra.mxu1 %v4047_v21  ;;  %v62_v30 = vsub.s32 0, %v61_v29  ;;  %v66_v32 = vsub.s32 1, %v61_v29  ;;  %s4217_s22 = smov 64   ;;  %s4218_s23 = smov 48   ;;  %v70_v60 = vsub.s32 2, %v61_v29 }
  0x1e   :  { %3496 = vmatprep.subr.bf16.mxu1 %v4048_v23  ;;  %s4219_s24 = smov 32   ;;  %s4220_s25 = smov 16  }
  0x1f   :  { %230 = vmatpush1.bf16.msra.mxu0 %v4040_v22  ;;  %v63_v33 = vrot.slane %v58_v31, %v62_v30  ;;  %v67_v35 = vrot.slane %v58_v31, %v66_v32  ;;  %v71_v63 = vrot.slane %v58_v31, %v70_v60 }
  0x20   :  { %3512 = vmatprep.subr.bf16.mxu0 %v4212_v27 }
  0x21   :  { %3497 = vmatpush3.bf16.msra.mxu1 %v4048_v23 }
  0x22   :  { %248 = vmatmul.mubr.bf16.vlgmr.msra.gmra.mrb[0].mxu0 %v4041_v9  ;;  %3498 = vmatprep.subr.bf16.mxu1 %v4049_v24 }
  0x23   :  { %257 = vmatprep.mubr.bf16.mxu0 %v4211_v2 }
  0x25   :  { %3499 = vmatpush3.bf16.msra.mxu1 %v4049_v24 }
  0x26   :  { %3500 = vmatprep.subr.bf16.mxu1 %v4050_v25 }
  0x29   :  { %3501 = vmatpush3.bf16.msra.mxu1 %v4050_v25 }
  0x2a   :  { %258 = vmatmul.mubr.bf16.gmra.mrb[4].mxu0 %v4042_v26  ;;  %3506 = vmatprep.subr.bf16.mxu1 %v4212_v27 }
  0x2b   :  { %3514 = vmatprep.mubr.msk.bf16.mxu0 %vm4213_vm0, %v4212_v27 }
  0x2c   :  { %3503 = vmatmul.mubr.bf16.vlgmr.msra.gmra.mrb[0].mxu1 %v4042_v26 }
  0x2d   :  { %3508 = vmatprep.mubr.msk.bf16.mxu1 %vm4213_vm0, %v4212_v27 }
  0xf5   :  { %v249_v34 = vpop.f32.mrb[0].mxu0 }
  0xf6   :  { %v251_v36 = vpop.f32.mrb[1].mxu0  ;;  %v250_v38 = vadd.f32 %v249_v34, %v63_v33 }
  0xf7   :  { %v253_v37 = vpop.f32.mrb[2].mxu0  ;;  %v252_v41 = vadd.f32 %v251_v36, %v67_v35 }
  0xf8   :  { %v254_v39 = vadd.f32 %v253_v37, %v63_v33  ;;  %v255_v40 = vpop.f32.mrb[3].mxu0 }
  0xf9   :  { %v256_v42 = vadd.f32 %v255_v40, %v67_v35 }
  0xfa   :  { %v3817_v43 = vpack.i.bf16 %v254_v39, %v250_v38  ;;  %v405_v44 = vpack.c.bf16 %v254_v39, %v250_v38 }
  0xfb   :  { %v3807_v45 = vpack.i.bf16 %v256_v42, %v252_v41  ;;  %v509_v46 = vpack.c.bf16 %v256_v42, %v252_v41 }
  0xfc   :  { %3818 = vrot.lane.b32.xlu1 %v3817_v43, %s4214_s20 }
  0xfd   :  { %3808 = vrot.lane.b32.xlu0 %v3807_v45, %s4214_s20  ;;  %v634_v47 = vsel %vm629_vm1, %v509_v46, 0  ;;  %v259_v48 = vpop.f32.mrb[4].mxu0 }
  0xfe   :  { %3507 = vmatpush3.bf16.xpose.msra.mxu1 %v634_v47  ;;  %v4344_v49 = vadd.f32 %v259_v48, %v63_v33  ;;  %v261_v50 = vpop.f32.mrb[5].mxu0 }
  0xff   :  { %v4346_v51 = vadd.f32 %v261_v50, %v67_v35  ;;  %v263_v52 = vpop.f32.mrb[6].mxu0  ;;  %3518 = vmatprep.subr.bf16.mxu1 %v4212_v27  ;;  %v3504_v61 = vpop.f32.mrb[0].mxu1 }
 0x100   :  { %3843 = vrot.lane.b32.xlu1 %v3807_v45, %s4215_s2  ;;  %v4350_v53 = vadd.f32 %v263_v52, %v63_v33  ;;  %v265_v54 = vpop.f32.mrb[7].mxu0  ;;  %v302_v62 = vpop.f32.mrb[1].mxu1  ;;  %v4400_v5 = vadd.f32 %v3504_v61, %v71_v63 }
 0x101   :  { %3813 = vrot.lane.b32.xlu0 %v3807_v45, %s4216_s21  ;;  %v4353_v55 = vadd.f32 %v265_v54, %v67_v35  ;;  %v3505_v0 = vpop.f32.mrb[2].mxu1  ;;  %v4378_v2 = vadd.f32 %v302_v62, %v71_v63 }
 0x102   :  { %v3882_v56 = vpack.i.bf16 %v4350_v53, %v4344_v49  ;;  %v413_v59 = vpack.c.bf16 %v4350_v53, %v4344_v49  ;;  %v305_v1 = vpop.f32.mrb[3].mxu1  ;;  %v4402_v6 = vadd.f32 %v3505_v0, %v71_v63 }
 0x103   :  { %v3907_v57 = vpack.i.bf16 %v4353_v55, %v4346_v51  ;;  %v517_v58 = vpack.c.bf16 %v4353_v55, %v4346_v51  ;;  %v4380_v3 = vadd.f32 %v305_v1, %v71_v63 }
 0x104   :  { %3848 = vrot.lane.b32.xlu1 %v3807_v45, %s4217_s22  ;;  %v4408_v7 = vpack.i.bf16 %v4402_v6, %v4400_v5 }
 0x105   :  { %3823 = vrot.lane.b32.xlu0 %v3817_v43, %s4216_s21  ;;  %3509 = vmatmul.mubr.msk.bf16.vlgmr.msra.gmra.mrb[4].mxu1 %vm629_vm1, %v405_v44  ;;  %v3947_v4 = vpack.i.bf16 %v4380_v3, %v4378_v2  ;;  %v613_v8 = vpack.c.bf16 %v4380_v3, %v4378_v2 }
 0x106   :  { %3520 = vmatprep.mubr.msk.bf16.mxu1 %vm4213_vm0, %v4212_v27 }
 0x108   :  { %3853 = vrot.lane.b32.xlu1 %v3807_v45, %s4218_s23 }
 0x109   :  { %3828 = vrot.lane.b32.xlu0 %v3817_v43, %s4215_s2 }
 0x10c   :  { %3858 = vrot.lane.b32.xlu1 %v3807_v45, %s4219_s24 }
 0x10d   :  { %3833 = vrot.lane.b32.xlu0 %v3817_v43, %s4217_s22 }
 0x110   :  { %3863 = vrot.lane.b32.xlu1 %v3807_v45, %s4220_s25 }
 0x111   :  { %3838 = vrot.lane.b32.xlu0 %v3817_v43, %s4218_s23 }
 0x114   :  { %3873 = vrot.lane.b32.xlu1 %v3817_v43, %s4220_s25 }
 0x115   :  { %3868 = vrot.lane.b32.xlu0 %v3817_v43, %s4219_s24 }
 0x118   :  { %3908 = vrot.lane.b32.xlu1 %v3907_v57, %s4216_s21 }
 0x119   :  { %3878 = vrot.lane.b32.xlu0 %v3907_v57, %s4214_s20 }
 0x11c   :  { %3913 = vrot.lane.b32.xlu1 %v3907_v57, %s4215_s2 }
 0x11d   :  { %3883 = vrot.lane.b32.xlu0 %v3882_v56, %s4214_s20 }
 0x120   :  { %3918 = vrot.lane.b32.xlu1 %v3907_v57, %s4217_s22 }
 0x121   :  { %3888 = vrot.lane.b32.xlu0 %v3882_v56, %s4216_s21 }
 0x124   :  { %3923 = vrot.lane.b32.xlu1 %v3907_v57, %s4218_s23 }
 0x125   :  { %3893 = vrot.lane.b32.xlu0 %v3882_v56, %s4215_s2 }
 0x128   :  { %3928 = vrot.lane.b32.xlu1 %v3907_v57, %s4219_s24 }
 0x129   :  { %3898 = vrot.lane.b32.xlu0 %v3882_v56, %s4217_s22 }
 0x12c   :  { %3933 = vrot.lane.b32.xlu1 %v3907_v57, %s4220_s25 }
 0x12d   :  { %3903 = vrot.lane.b32.xlu0 %v3882_v56, %s4218_s23 }
 0x130   :  { %3943 = vrot.lane.b32.xlu1 %v3882_v56, %s4220_s25 }
 0x131   :  { %3938 = vrot.lane.b32.xlu0 %v3882_v56, %s4219_s24 }
 0x134   :  { %3948 = vrot.lane.b32.xlu1 %v3947_v4, %s4214_s20 }
 0x135   :  { %3953 = vrot.lane.b32.xlu0 %v3947_v4, %s4216_s21 }
 0x138   :  { %3958 = vrot.lane.b32.xlu1 %v3947_v4, %s4215_s2 }
 0x139   :  { %3968 = vrot.lane.b32.xlu0 %v3947_v4, %s4218_s23 }
 0x13c   :  { %3963 = vrot.lane.b32.xlu1 %v3947_v4, %s4217_s22 }
 0x13d   :  { %3978 = vrot.lane.b32.xlu0 %v3947_v4, %s4220_s25 }
 0x140   :  { %3973 = vrot.lane.b32.xlu1 %v3947_v4, %s4219_s24 }
 0x141   :  { %3988 = vrot.lane.b32.xlu0 %v4408_v7, %s4216_s21 }
 0x144   :  { %3983 = vrot.lane.b32.xlu1 %v4408_v7, %s4214_s20 }
 0x148   :  { %3993 = vrot.lane.b32.xlu1 %v4408_v7, %s4215_s2 }
 0x14c   :  { %3998 = vrot.lane.b32.xlu1 %v4408_v7, %s4217_s22 }
 0x150   :  { %4003 = vrot.lane.b32.xlu1 %v4408_v7, %s4218_s23 }
 0x16e   :  { %v3819_v9 = vpop.permute.xlu1 %3818 }
 0x16f   :  { %v3809_v10 = vpop.permute.xlu0 %3808  ;;  %v3821_v21 = vunpack.i.h.bf16 %v3819_v9  ;;  %v3820_v22 = vunpack.i.l.bf16 %v3819_v9 }
 0x170   :  { %v3811_v11 = vunpack.i.h.bf16 %v3809_v10  ;;  %v3810_v12 = vunpack.i.l.bf16 %v3809_v10 }
 0x171   :  { %v406_v31 = vpack.c.bf16 %v3821_v21, %v3820_v22 }
 0x172   :  { %v3844_v13 = vpop.permute.xlu1 %3843  ;;  %v510_v14 = vpack.c.bf16 %v3811_v11, %v3810_v12 }
 0x173   :  { %v3846_v15 = vunpack.i.h.bf16 %v3844_v13  ;;  %v3814_v16 = vpop.permute.xlu0 %3813  ;;  %v3845_v17 = vunpack.i.l.bf16 %v3844_v13 }
 0x174   :  { %v3816_v18 = vunpack.i.h.bf16 %v3814_v16  ;;  %v3815_v19 = vunpack.i.l.bf16 %v3814_v16  ;;  %v681_v20 = vsel %vm629_vm1, %v510_v14, 0 }
 0x175   :  { %3513 = vmatpush3.bf16.xpose.msra.mxu0 %v681_v20  ;;  %v512_v30 = vpack.c.bf16 %v3846_v15, %v3845_v17 }
 0x176   :  { %v3849_v23 = vpop.permute.xlu1 %3848  ;;  %v511_v24 = vpack.c.bf16 %v3816_v18, %v3815_v19  ;;  %3524 = vmatprep.subr.bf16.mxu0 %v4212_v27 }
 0x177   :  { %v3824_v25 = vpop.permute.xlu0 %3823  ;;  %v3851_v26 = vunpack.i.h.bf16 %v3849_v23  ;;  %v3850_v28 = vunpack.i.l.bf16 %v3849_v23  ;;  %v775_v38 = vsel %vm629_vm1, %v512_v30, 0  ;;  %v1010_v30 = vsel %vm629_vm1, %v517_v58, 0 }
 0x178   :  { %v728_v29 = vsel %vm629_vm1, %v511_v24, 0  ;;  %v3826_v32 = vunpack.i.h.bf16 %v3824_v25  ;;  %v3825_v33 = vunpack.i.l.bf16 %v3824_v25 }
 0x179   :  { %3519 = vmatpush3.bf16.xpose.msra.mxu1 %v728_v29  ;;  %v513_v39 = vpack.c.bf16 %v3851_v26, %v3850_v28 }
 0x17a   :  { %v3854_v34 = vpop.permute.xlu1 %3853  ;;  %3530 = vmatprep.subr.bf16.mxu1 %v4212_v27  ;;  %v407_v40 = vpack.c.bf16 %v3826_v32, %v3825_v33 }
 0x17b   :  { %v3829_v35 = vpop.permute.xlu0 %3828  ;;  %v3856_v36 = vunpack.i.h.bf16 %v3854_v34  ;;  %v3855_v37 = vunpack.i.l.bf16 %v3854_v34  ;;  %v822_v48 = vsel %vm629_vm1, %v513_v39, 0 }
 0x17c   :  { %3515 = vmatmul.mubr.msk.bf16.vlgmr.msra.gmra.mrb[8].mxu0 %vm629_vm1, %v406_v31  ;;  %v3831_v41 = vunpack.i.h.bf16 %v3829_v35  ;;  %v3830_v42 = vunpack.i.l.bf16 %v3829_v35 }
 0x17d   :  { %3525 = vmatpush3.bf16.xpose.msra.mxu0 %v775_v38  ;;  %3526 = vmatprep.mubr.msk.bf16.mxu0 %vm4213_vm0, %v4212_v27  ;;  %v514_v45 = vpack.c.bf16 %v3856_v36, %v3855_v37 }
 0x17e   :  { %v3859_v43 = vpop.permute.xlu1 %3858  ;;  %3536 = vmatprep.subr.bf16.mxu0 %v4212_v27  ;;  %v408_v50 = vpack.c.bf16 %v3831_v41, %v3830_v42 }
 0x17f   :  { %v3834_v44 = vpop.permute.xlu0 %3833  ;;  %v3861_v46 = vunpack.i.h.bf16 %v3859_v43  ;;  %v3860_v47 = vunpack.i.l.bf16 %v3859_v43  ;;  %v869_v63 = vsel %vm629_vm1, %v514_v45, 0 }
 0x180   :  { %3521 = vmatmul.mubr.msk.bf16.vlgmr.msra.gmra.mrb[8].mxu1 %vm629_vm1, %v407_v40  ;;  %v3836_v52 = vunpack.i.h.bf16 %v3834_v44  ;;  %v3835_v54 = vunpack.i.l.bf16 %v3834_v44 }
 0x181   :  { %3531 = vmatpush3.bf16.xpose.msra.mxu1 %v822_v48  ;;  %3532 = vmatprep.mubr.msk.bf16.mxu1 %vm4213_vm0, %v4212_v27  ;;  %v515_v60 = vpack.c.bf16 %v3861_v46, %v3860_v47 }
 0x182   :  { %v3864_v56 = vpop.permute.xlu1 %3863  ;;  %3542 = vmatprep.subr.bf16.mxu1 %v4212_v27  ;;  %v409_v0 = vpack.c.bf16 %v3836_v52, %v3835_v54 }
 0x183   :  { %v3839_v57 = vpop.permute.xlu0 %3838  ;;  %v3866_v61 = vunpack.i.h.bf16 %v3864_v56  ;;  %v3865_v62 = vunpack.i.l.bf16 %v3864_v56  ;;  %v916_v12 = vsel %vm629_vm1, %v515_v60, 0 }
 0x184   :  { %3527 = vmatmul.mubr.msk.bf16.vlgmr.msra.gmra.mrb[12].mxu0 %vm629_vm1, %v408_v50  ;;  %v3841_v1 = vunpack.i.h.bf16 %v3839_v57  ;;  %v3840_v4 = vunpack.i.l.bf16 %v3839_v57 }
 0x185   :  { %3537 = vmatpush3.bf16.xpose.msra.mxu0 %v869_v63  ;;  %3538 = vmatprep.mubr.msk.bf16.mxu0 %vm4213_vm0, %v4212_v27  ;;  %v516_v11 = vpack.c.bf16 %v3866_v61, %v3865_v62 }
 0x186   :  { %v3874_v9 = vpop.permute.xlu1 %3873  ;;  %3548 = vmatprep.subr.bf16.mxu0 %v4212_v27  ;;  %v410_v13 = vpack.c.bf16 %v3841_v1, %v3840_v4 }
 0x187   :  { %v3869_v10 = vpop.permute.xlu0 %3868  ;;  %v963_v20 = vsel %vm629_vm1, %v516_v11, 0  ;;  %v3876_v21 = vunpack.i.h.bf16 %v3874_v9  ;;  %v3875_v22 = vunpack.i.l.bf16 %v3874_v9 }
 0x188   :  { %3533 = vmatmul.mubr.msk.bf16.vlgmr.msra.gmra.mrb[12].mxu1 %vm629_vm1, %v409_v0  ;;  %v3871_v14 = vunpack.i.h.bf16 %v3869_v10  ;;  %v3870_v15 = vunpack.i.l.bf16 %v3869_v10 }
 0x189   :  { %3543 = vmatpush3.bf16.xpose.msra.mxu1 %v916_v12  ;;  %3544 = vmatprep.mubr.msk.bf16.mxu1 %vm4213_vm0, %v4212_v27  ;;  %v412_v31 = vpack.c.bf16 %v3876_v21, %v3875_v22 }
 0x18a   :  { %v3909_v16 = vpop.permute.xlu1 %3908  ;;  %3554 = vmatprep.subr.bf16.mxu1 %v4212_v27  ;;  %v411_v23 = vpack.c.bf16 %v3871_v14, %v3870_v15 }
 0x18b   :  { %v3879_v17 = vpop.permute.xlu0 %3878  ;;  %v3911_v24 = vunpack.i.h.bf16 %v3909_v16  ;;  %v3910_v25 = vunpack.i.l.bf16 %v3909_v16 }
 0x18c   :  { %v3881_v18 = vunpack.i.h.bf16 %v3879_v17  ;;  %v3880_v19 = vunpack.i.l.bf16 %v3879_v17  ;;  %3539 = vmatmul.mubr.msk.bf16.vlgmr.msra.gmra.mrb[16].mxu0 %vm629_vm1, %v410_v13 }
 0x18d   :  { %3549 = vmatpush3.bf16.xpose.msra.mxu0 %v963_v20  ;;  %3550 = vmatprep.mubr.msk.bf16.mxu0 %vm4213_vm0, %v4212_v27  ;;  %v519_v32 = vpack.c.bf16 %v3911_v24, %v3910_v25 }
 0x18e   :  { %v518_v26 = vpack.c.bf16 %v3881_v18, %v3880_v19  ;;  %v3914_v28 = vpop.permute.xlu1 %3913  ;;  %3560 = vmatprep.subr.bf16.mxu0 %v4212_v27 }
 0x18f   :  { %v3884_v29 = vpop.permute.xlu0 %3883  ;;  %v3916_v36 = vunpack.i.h.bf16 %v3914_v28  ;;  %v3915_v37 = vunpack.i.l.bf16 %v3914_v28  ;;  %v1104_v38 = vsel %vm629_vm1, %v519_v32, 0 }
 0x190   :  { %3545 = vmatmul.mubr.msk.bf16.vlgmr.msra.gmra.mrb[16].mxu1 %vm629_vm1, %v411_v23  ;;  %v1057_v34 = vsel %vm629_vm1, %v518_v26, 0  ;;  %v3886_v51 = vunpack.i.h.bf16 %v3884_v29  ;;  %v3885_v55 = vunpack.i.l.bf16 %v3884_v29 }
 0x191   :  { %3555 = vmatpush3.bf16.xpose.msra.mxu1 %v1010_v30  ;;  %3556 = vmatprep.mubr.msk.bf16.mxu1 %vm4213_vm0, %v4212_v27  ;;  %v520_v40 = vpack.c.bf16 %v3916_v36, %v3915_v37 }
 0x192   :  { %v3919_v33 = vpop.permute.xlu1 %3918  ;;  %3566 = vmatprep.subr.bf16.mxu1 %v4212_v27  ;;  %v414_v43 = vpack.c.bf16 %v3886_v51, %v3885_v55 }
 0x193   :  { %v3889_v35 = vpop.permute.xlu0 %3888  ;;  %v3921_v41 = vunpack.i.h.bf16 %v3919_v33  ;;  %v3920_v42 = vunpack.i.l.bf16 %v3919_v33  ;;  %v1151_v49 = vsel %vm629_vm1, %v520_v40, 0 }
 0x194   :  { %3551 = vmatmul.mubr.msk.bf16.vlgmr.msra.gmra.mrb[20].mxu0 %vm629_vm1, %v412_v31  ;;  %v3891_v44 = vunpack.i.h.bf16 %v3889_v35  ;;  %v3890_v45 = vunpack.i.l.bf16 %v3889_v35 }
 0x195   :  { %3561 = vmatpush3.bf16.xpose.msra.mxu0 %v1057_v34  ;;  %3562 = vmatprep.mubr.msk.bf16.mxu0 %vm4213_vm0, %v4212_v27  ;;  %v521_v48 = vpack.c.bf16 %v3921_v41, %v3920_v42 }
 0x196   :  { %v3924_v58 = vpop.permute.xlu1 %3923  ;;  %3572 = vmatprep.subr.bf16.mxu0 %v4212_v27  ;;  %v415_v53 = vpack.c.bf16 %v3891_v44, %v3890_v45 }
 0x197   :  { %v3894_v39 = vpop.permute.xlu0 %3893  ;;  %v3926_v50 = vunpack.i.h.bf16 %v3924_v58  ;;  %v3925_v52 = vunpack.i.l.bf16 %v3924_v58  ;;  %v1198_v61 = vsel %vm629_vm1, %v521_v48, 0 }
 0x198   :  { %3557 = vmatmul.mubr.msk.bf16.vlgmr.msra.gmra.mrb[20].mxu1 %vm629_vm1, %v413_v59  ;;  %v3896_v59 = vunpack.i.h.bf16 %v3894_v39  ;;  %v3895_v54 = vunpack.i.l.bf16 %v3894_v39 }
 0x199   :  { %3567 = vmatpush3.bf16.xpose.msra.mxu1 %v1104_v38  ;;  %3568 = vmatprep.mubr.msk.bf16.mxu1 %vm4213_vm0, %v4212_v27  ;;  %v522_v56 = vpack.c.bf16 %v3926_v50, %v3925_v52 }
 0x19a   :  { %3578 = vmatprep.subr.bf16.mxu1 %v4212_v27  ;;  %v3929_v46 = vpop.permute.xlu1 %3928  ;;  %v416_v0 = vpack.c.bf16 %v3896_v59, %v3895_v54 }
 0x19b   :  { %v3899_v47 = vpop.permute.xlu0 %3898  ;;  %v3931_v57 = vunpack.i.h.bf16 %v3929_v46  ;;  %v3930_v60 = vunpack.i.l.bf16 %v3929_v46  ;;  %v1245_v12 = vsel %vm629_vm1, %v522_v56, 0 }
 0x19c   :  { %3563 = vmatmul.mubr.msk.bf16.vlgmr.msra.gmra.mrb[24].mxu0 %vm629_vm1, %v414_v43  ;;  %v3901_v1 = vunpack.i.h.bf16 %v3899_v47  ;;  %v3900_v4 = vunpack.i.l.bf16 %v3899_v47 }
 0x19d   :  { %3573 = vmatpush3.bf16.xpose.msra.mxu0 %v1151_v49  ;;  %3574 = vmatprep.mubr.msk.bf16.mxu0 %vm4213_vm0, %v4212_v27  ;;  %v523_v9 = vpack.c.bf16 %v3931_v57, %v3930_v60 }
 0x19e   :  { %3584 = vmatprep.subr.bf16.mxu0 %v4212_v27  ;;  %v3934_v62 = vpop.permute.xlu1 %3933  ;;  %v417_v13 = vpack.c.bf16 %v3901_v1, %v3900_v4 }
 0x19f   :  { %v3904_v63 = vpop.permute.xlu0 %3903  ;;  %v3936_v10 = vunpack.i.h.bf16 %v3934_v62  ;;  %v3935_v11 = vunpack.i.l.bf16 %v3934_v62  ;;  %v1292_v19 = vsel %vm629_vm1, %v523_v9, 0 }
 0x1a0   :  { %3569 = vmatmul.mubr.msk.bf16.vlgmr.msra.gmra.mrb[24].mxu1 %vm629_vm1, %v415_v53  ;;  %v3906_v14 = vunpack.i.h.bf16 %v3904_v63  ;;  %v3905_v15 = vunpack.i.l.bf16 %v3904_v63 }
 0x1a1   :  { %3579 = vmatpush3.bf16.xpose.msra.mxu1 %v1198_v61  ;;  %3580 = vmatprep.mubr.msk.bf16.mxu1 %vm4213_vm0, %v4212_v27  ;;  %v524_v17 = vpack.c.bf16 %v3936_v10, %v3935_v11 }
 0x1a2   :  { %3590 = vmatprep.subr.bf16.mxu1 %v4212_v27  ;;  %v3944_v18 = vpop.permute.xlu1 %3943  ;;  %v418_v20 = vpack.c.bf16 %v3906_v14, %v3905_v15 }
 0x1a3   :  { %v3939_v16 = vpop.permute.xlu0 %3938  ;;  %v1339_v23 = vsel %vm629_vm1, %v524_v17, 0  ;;  %v3946_v28 = vunpack.i.h.bf16 %v3944_v18  ;;  %v3945_v29 = vunpack.i.l.bf16 %v3944_v18 }
 0x1a4   :  { %3575 = vmatmul.mubr.msk.bf16.vlgmr.msra.gmra.mrb[28].mxu0 %vm629_vm1, %v416_v0  ;;  %v3941_v21 = vunpack.i.h.bf16 %v3939_v16  ;;  %v3940_v22 = vunpack.i.l.bf16 %v3939_v16 }
 0x1a5   :  { %3585 = vmatpush3.bf16.xpose.msra.mxu0 %v1245_v12  ;;  %3586 = vmatprep.mubr.msk.bf16.mxu0 %vm4213_vm0, %v4212_v27  ;;  %v420_v32 = vpack.c.bf16 %v3946_v28, %v3945_v29 }
 0x1a6   :  { %3596 = vmatprep.subr.bf16.mxu0 %v4212_v27  ;;  %v3949_v24 = vpop.permute.xlu1 %3948  ;;  %v419_v30 = vpack.c.bf16 %v3941_v21, %v3940_v22 }
 0x1a7   :  { %v3951_v25 = vunpack.i.h.bf16 %v3949_v24  ;;  %v3950_v26 = vunpack.i.l.bf16 %v3949_v24  ;;  %v4525_v58 = vpop.permute.xlu0 %3953 }
 0x1a8   :  { %3581 = vmatmul.mubr.msk.bf16.vlgmr.msra.gmra.mrb[28].mxu1 %vm629_vm1, %v417_v13 }
 0x1a9   :  { %3591 = vmatpush3.bf16.xpose.msra.mxu1 %v1292_v19  ;;  %3592 = vmatprep.mubr.msk.bf16.mxu1 %vm4213_vm0, %v4212_v27  ;;  %v614_v31 = vpack.c.bf16 %v3951_v25, %v3950_v26 }
 0x1aa   :  { %3602 = vmatprep.subr.bf16.mxu1 %v4212_v27  ;;  %v4517_v36 = vpop.permute.xlu1 %3958 }
 0x1ab   :  { %v4541_v48 = vpop.permute.xlu0 %3968 }
 0x1ac   :  { %3587 = vmatmul.mubr.msk.bf16.vlgmr.msra.gmra.mrb[32].mxu0 %vm629_vm1, %v418_v20 }
 0x1ad   :  { %3597 = vmatpush3.bf16.xpose.msra.mxu0 %v1339_v23  ;;  %3598 = vmatprep.mubr.msk.bf16.mxu0 %vm4213_vm0, %v4212_v27 }
 0x1ae   :  { %3608 = vmatprep.subr.bf16.mxu0 %v4212_v27  ;;  %v4519_v37 = vpop.permute.xlu1 %3963 }
 0x1af   :  { %v4555_v61 = vpop.permute.xlu0 %3978 }
 0x1b0   :  { %3593 = vmatmul.mubr.msk.bf16.vlgmr.msra.gmra.mrb[32].mxu1 %vm629_vm1, %v419_v30 }
 0x1b1   :  { %3603 = vmatpush3.bf16.msra.mxu1 %v613_v8  ;;  %3604 = vmatprep.mubr.msk.bf16.mxu1 %vm4213_vm0, %v4212_v27 }
 0x1b2   :  { %3614 = vmatprep.subr.bf16.mxu1 %v4212_v27  ;;  %v4521_v51 = vpop.permute.xlu1 %3973 }
 0x1b3   :  { %v4573_v15 = vpop.permute.xlu0 %3988 }
 0x1b4   :  { %3599 = vmatmul.mubr.msk.bf16.vlgmr.msra.gmra.mrb[36].mxu0 %vm629_vm1, %v420_v32 }
 0x1b5   :  { %3609 = vmatpush3.bf16.msra.mxu0 %v614_v31  ;;  %3610 = vmatprep.mubr.msk.bf16.mxu0 %vm4213_vm0, %v4212_v27 }
 0x1b6   :  { %3620 = vmatprep.subr.bf16.mxu0 %v4212_v27  ;;  %v4531_v41 = vpop.permute.xlu1 %3983 }
 0x1ba   :  { %v4545_v49 = vpop.permute.xlu1 %3993 }
 0x1be   :  { %v4563_v4 = vpop.permute.xlu1 %3998 }
 0x1c2   :  { %v4577_v18 = vpop.permute.xlu1 %4003 }
 0x1d8   :  { %v4509_v33 = vpop.f32.mrb[4].mxu1 }
 0x1d9   :  { %v3510_v34 = vpop.f32.mrb[5].mxu1  ;;  %v1382_v2 = vsel %vm629_vm1, %v4509_v33, -inf }
 0x1da   :  { %1383 = vmax.xlane.f32.xlu0 %v1382_v2  ;;  %v4513_v3 = vpop.f32.mrb[6].mxu1 }
 0x1db   :  { %v3511_v8 = vpop.f32.mrb[7].mxu1  ;;  %v1385_v35 = vsel %vm629_vm1, %v4513_v3, -inf }
 0x1dc   :  { %1386 = vmax.xlane.f32.xlu1 %v1385_v35 }
 0x24f   :  { %v4523_v55 = vpop.f32.mrb[8].mxu0 }
 0x250   :  { %v3516_v38 = vpop.f32.mrb[9].mxu0  ;;  %v1388_v39 = vsel %vm629_vm1, %v4523_v55, -inf }
 0x251   :  { %v4529_v40 = vpop.f32.mrb[10].mxu0  ;;  %1389 = vmax.xlane.f32.xlu0 %v1388_v39 }
 0x252   :  { %v3517_v42 = vpop.f32.mrb[11].mxu0  ;;  %v1391_v45 = vsel %vm629_vm1, %v4529_v40, -inf }
 0x253   :  { %v4533_v43 = vpop.f32.mrb[8].mxu1 }
 0x254   :  { %v3522_v44 = vpop.f32.mrb[9].mxu1  ;;  %v1394_v46 = vsel %vm629_vm1, %v4533_v43, -inf }
 0x255   :  { %1392 = vmax.xlane.f32.xlu0 %v1391_v45  ;;  %1395 = vmax.xlane.f32.xlu1 %v1394_v46  ;;  %v4539_v47 = vpop.f32.mrb[10].mxu1 }
 0x256   :  { %v3523_v50 = vpop.f32.mrb[11].mxu1  ;;  %v1397_v54 = vsel %vm629_vm1, %v4539_v47, -inf }
 0x257   :  { %v4543_v52 = vpop.f32.mrb[12].mxu0 }
 0x258   :  { %v3528_v53 = vpop.f32.mrb[13].mxu0  ;;  %v1400_v59 = vsel %vm629_vm1, %v4543_v52, -inf }
 0x259   :  { %v4551_v56 = vpop.f32.mrb[14].mxu0  ;;  %1401 = vmax.xlane.f32.xlu1 %v1400_v59  ;;  %1398 = vmax.xlane.f32.xlu0 %v1397_v54 }
 0x25a   :  { %v3529_v57 = vpop.f32.mrb[15].mxu0  ;;  %v1403_v63 = vsel %vm629_vm1, %v4551_v56, -inf }
 0x25b   :  { %v4553_v60 = vpop.f32.mrb[12].mxu1  ;;  %v3956_v57 = vunpack.i.h.bf16 %v4525_v58 }
 0x25c   :  { %v3534_v62 = vpop.f32.mrb[13].mxu1  ;;  %v1406_v0 = vsel %vm629_vm1, %v4553_v60, -inf }
 0x25d   :  { %1404 = vmax.xlane.f32.xlu0 %v1403_v63  ;;  %1407 = vmax.xlane.f32.xlu1 %v1406_v0  ;;  %v4561_v1 = vpop.f32.mrb[14].mxu1  ;;  %v3955_v62 = vunpack.i.l.bf16 %v4525_v58 }
 0x25e   :  { %v3535_v9 = vpop.f32.mrb[15].mxu1  ;;  %v1409_v13 = vsel %vm629_vm1, %v4561_v1, -inf }
 0x25f   :  { %v4565_v10 = vpop.f32.mrb[16].mxu0 }
 0x260   :  { %v3540_v11 = vpop.f32.mrb[17].mxu0  ;;  %v1412_v12 = vsel %vm629_vm1, %v4565_v10, -inf }
 0x261   :  { %v4571_v14 = vpop.f32.mrb[18].mxu0  ;;  %1413 = vmax.xlane.f32.xlu1 %v1412_v12  ;;  %1410 = vmax.xlane.f32.xlu0 %v1409_v13 }
 0x262   :  { %v3541_v16 = vpop.f32.mrb[19].mxu0  ;;  %v1415_v20 = vsel %vm629_vm1, %v4571_v14, -inf }
 0x263   :  { %v4575_v17 = vpop.f32.mrb[16].mxu1 }
 0x264   :  { %v3546_v19 = vpop.f32.mrb[17].mxu1  ;;  %v1418_v21 = vsel %vm629_vm1, %v4575_v17, -inf }
 0x265   :  { %1416 = vmax.xlane.f32.xlu0 %v1415_v20  ;;  %1419 = vmax.xlane.f32.xlu1 %v1418_v21  ;;  %v4583_v22 = vpop.f32.mrb[18].mxu1  ;;  %v615_v19 = vpack.c.bf16 %v3956_v57, %v3955_v62 }
 0x266   :  { %v3547_v23 = vpop.f32.mrb[19].mxu1  ;;  %v1421_v30 = vsel %vm629_vm1, %v4583_v22, -inf }
 0x267   :  { %v4585_v24 = vpop.f32.mrb[20].mxu0  ;;  %v1384_v25 = vpop.xlane.xlu0 %1383 }
 0x268   :  { %v1478_v26 = vsub.f32 %v4509_v33, %v1384_v25  ;;  %v3552_v28 = vpop.f32.mrb[21].mxu0  ;;  %v1424_v29 = vsel %vm629_vm1, %v4585_v24, -inf }
 0x269   :  { %v4592_v31 = vpop.f32.mrb[22].mxu0  ;;  %v1387_v32 = vpop.xlane.xlu1 %1386  ;;  %1425 = vmax.xlane.f32.xlu1 %v1424_v29  ;;  %1422 = vmax.xlane.f32.xlu0 %v1421_v30 }
 0x26a   :  { %v1510_v34 = vmul.f32 1.442695, %v1478_v26  ;;  %v1479_v2 = vsub.f32 %v4513_v3, %v1387_v32  ;;  %v3553_v8 = vpop.f32.mrb[23].mxu0  ;;  %v1427_v50 = vsel %vm629_vm1, %v4592_v31, -inf }
 0x26b   :  { %v4595_v35 = vpop.f32.mrb[20].mxu1 }
 0x26c   :  { %v1512_v38 = vmul.f32 1.442695, %v1479_v2  ;;  %v3558_v33 = vpop.f32.mrb[21].mxu1  ;;  %v1430_v39 = vsel %vm629_vm1, %v4595_v35, -inf  ;;  %4059 = vpow2.f32 %v1510_v34 }
 0x26d   :  { %1431 = vmax.xlane.f32.xlu0 %v1430_v39  ;;  %v4599_v42 = vpop.f32.mrb[22].mxu1 }
 0x26e   :  { %4061 = vpow2.f32 %v1512_v38  ;;  %v3559_v44 = vpop.f32.mrb[23].mxu1  ;;  %v1433_v0 = vsel %vm629_vm1, %v4599_v42, -inf }
 0x26f   :  { %v4601_v45 = vpop.f32.mrb[24].mxu0 }
 0x270   :  { %v3564_v46 = vpop.f32.mrb[25].mxu0  ;;  %v1436_v3 = vsel %vm629_vm1, %v4601_v45, -inf }
 0x271   :  { %v4607_v53 = vpop.f32.mrb[26].mxu0  ;;  %1437 = vmax.xlane.f32.xlu1 %v1436_v3  ;;  %1428 = vmax.xlane.f32.xlu0 %v1427_v50 }
 0x272   :  { %v3565_v59 = vpop.f32.mrb[27].mxu0  ;;  %v1439_v30 = vsel %vm629_vm1, %v4607_v53, -inf }
 0x273   :  { %v4609_v54 = vpop.f32.mrb[24].mxu1 }
 0x274   :  { %v3570_v63 = vpop.f32.mrb[25].mxu1  ;;  %v1442_v21 = vsel %vm629_vm1, %v4609_v54, -inf }
 0x275   :  { %1434 = vmax.xlane.f32.xlu0 %v1433_v0  ;;  %v4615_v9 = vpop.f32.mrb[26].mxu1 }
 0x276   :  { %v3571_v11 = vpop.f32.mrb[27].mxu1  ;;  %v4060_v12 = vpop.eup %4059  ;;  %v1445_v33 = vsel %vm629_vm1, %v4615_v9, -inf }
 0x277   :  { %v4617_v13 = vpop.f32.mrb[28].mxu0 }
 0x278   :  { %v4062_v16 = vpop.eup %4061  ;;  %v3576_v20 = vpop.f32.mrb[29].mxu0  ;;  %v1448_v59 = vsel %vm629_vm1, %v4617_v13, -inf }
 0x279   :  { %v4621_v23 = vpop.f32.mrb[30].mxu0  ;;  %1443 = vmax.xlane.f32.xlu0 %v1442_v21  ;;  %v1670_v58 = vpack.c.bf16 %v4062_v16, %v4060_v12 }
 0x27a   :  { %v3577_v25 = vpop.f32.mrb[31].mxu0  ;;  %v1451_v26 = vsel %vm629_vm1, %v4621_v23, -inf }
 0x27b   :  { %3605 = vmatmul.mubr.msk.bf16.vlgmr.msra.gmra.mrb[36].mxu1 %vm629_vm1, %v1670_v58  ;;  %1452 = vmax.xlane.f32.xlu1 %v1451_v26  ;;  %v4626_v28 = vpop.f32.mrb[28].mxu1 }
 0x27c   :  { %v3582_v29 = vpop.f32.mrb[29].mxu1  ;;  %3615 = vmatpush3.bf16.msra.mxu1 %v615_v19  ;;  %3616 = vmatprep.mubr.msk.bf16.mxu1 %vm4213_vm0, %v4212_v27  ;;  %v1454_v19 = vsel %vm629_vm1, %v4626_v28, -inf }
 0x27d   :  { %1440 = vmax.xlane.f32.xlu0 %v1439_v30  ;;  %v4632_v32 = vpop.f32.mrb[30].mxu1  ;;  %3626 = vmatprep.subr.bf16.mxu1 %v4212_v27  ;;  %v1577_v30 = vsel %vm629_vm1, %v4062_v16, 0.0 }
 0x27e   :  { %v3583_v34 = vpop.f32.mrb[31].mxu1  ;;  %v1457_v2 = vsel %vm629_vm1, %v4632_v32, -inf }
 0x27f   :  { %v4637_v8 = vpop.f32.mrb[32].mxu0  ;;  %1458 = vmax.xlane.f32.xlu1 %v1457_v2  ;;  %v1574_v34 = vsel %vm629_vm1, %v4060_v12, 0.0 }
 0x280   :  { %v3588_v38 = vpop.f32.mrb[33].mxu0  ;;  %v1460_v25 = vsel %vm629_vm1, %v4637_v8, -inf }
 0x281   :  { %v4641_v39 = vpop.f32.mrb[34].mxu0  ;;  %1446 = vmax.xlane.f32.xlu0 %v1445_v33 }
 0x282   :  { %v3589_v44 = vpop.f32.mrb[35].mxu0  ;;  %v1463_v46 = vsel %vm629_vm1, %v4641_v39, -inf }
 0x283   :  { %1464 = vmax.xlane.f32.xlu1 %v1463_v46  ;;  %v4645_v3 = vpop.f32.mrb[32].mxu1 }
 0x284   :  { %v3594_v50 = vpop.f32.mrb[33].mxu1  ;;  %v1466_v29 = vsel %vm629_vm1, %v4645_v3, -inf }
 0x285   :  { %1449 = vmax.xlane.f32.xlu0 %v1448_v59  ;;  %v4649_v57 = vpop.f32.mrb[34].mxu1 }
 0x286   :  { %v3595_v62 = vpop.f32.mrb[35].mxu1  ;;  %v1469_v63 = vsel %vm629_vm1, %v4649_v57, -inf }
 0x287   :  { %v4653_v0 = vpop.f32.mrb[36].mxu0  ;;  %1470 = vmax.xlane.f32.xlu1 %v1469_v63 }
 0x288   :  { %v3600_v11 = vpop.f32.mrb[37].mxu0  ;;  %v1472_v58 = vsel %vm629_vm1, %v4653_v0, -inf }
 0x289   :  { %v4657_v20 = vpop.f32.mrb[38].mxu0  ;;  %1455 = vmax.xlane.f32.xlu0 %v1454_v19 }
 0x28a   :  { %v3601_v21 = vpop.f32.mrb[39].mxu0  ;;  %v1475_v26 = vsel %vm629_vm1, %v4657_v20, -inf }
 0x28b   :  { %1473 = vmax.xlane.f32.xlu1 %v1472_v58 }
 0x28d   :  { %1461 = vmax.xlane.f32.xlu0 %v1460_v25 }
 0x28f   :  { %1476 = vmax.xlane.f32.xlu1 %v1475_v26 }
 0x291   :  { %1467 = vmax.xlane.f32.xlu0 %v1466_v29 }
 0x2a0   :  { %4013 = vrot.lane.b32.xlu1 %v4408_v7, %s4220_s25 }
 0x2a7   :  { %4008 = vrot.lane.b32.xlu0 %v4408_v7, %s4219_s24 }
 0x2c4   :  { %1578 = vadd.xlane.f32.xlu1 %v1577_v30  ;;  %v3961_v30 = vunpack.i.h.bf16 %v4517_v36 }
 0x2c6   :  { %1575 = vadd.xlane.f32.xlu0 %v1574_v34 }
 0x2de   :  { %v1390_v2 = vpop.xlane.xlu0 %1389 }
 0x2df   :  { %v1480_v38 = vsub.f32 %v4523_v55, %v1390_v2 }
 0x2e1   :  { %v1514_v33 = vmul.f32 1.442695, %v1480_v38 }
 0x2e2   :  { %v1393_v44 = vpop.xlane.xlu0 %1392  ;;  %v1396_v46 = vpop.xlane.xlu1 %1395 }
 0x2e3   :  { %4063 = vpow2.f32 %v1514_v33  ;;  %v1481_v50 = vsub.f32 %v4529_v40, %v1393_v44  ;;  %v1482_v59 = vsub.f32 %v4533_v43, %v1396_v46 }
 0x2e5   :  { %v1516_v62 = vmul.f32 1.442695, %v1481_v50  ;;  %v1518_v63 = vmul.f32 1.442695, %v1482_v59 }
 0x2e6   :  { %v1402_v7 = vpop.xlane.xlu1 %1401  ;;  %v1399_v11 = vpop.xlane.xlu0 %1398 }
 0x2e7   :  { %4065 = vpow2.f32 %v1516_v62  ;;  %v1484_v16 = vsub.f32 %v4543_v52, %v1402_v7  ;;  %v1483_v12 = vsub.f32 %v4539_v47, %v1399_v11  ;;  %v3960_v52 = vunpack.i.l.bf16 %v4517_v36 }
 0x2e8   :  { %4067 = vpow2.f32 %v1518_v63 }
 0x2e9   :  { %v1522_v19 = vmul.f32 1.442695, %v1484_v16  ;;  %v1520_v55 = vmul.f32 1.442695, %v1483_v12  ;;  %v616_v50 = vpack.c.bf16 %v3961_v30, %v3960_v52  ;;  %v3966_v16 = vunpack.i.h.bf16 %v4519_v37 }
 0x2ea   :  { %v1405_v21 = vpop.xlane.xlu0 %1404  ;;  %v1408_v58 = vpop.xlane.xlu1 %1407  ;;  %v3965_v12 = vunpack.i.l.bf16 %v4519_v37 }
 0x2eb   :  { %4069 = vpow2.f32 %v1522_v19  ;;  %v1485_v25 = vsub.f32 %v4551_v56, %v1405_v21  ;;  %v1486_v40 = vsub.f32 %v4553_v60, %v1408_v58 }
 0x2ec   :  { %4071 = vpow2.f32 %v1520_v55  ;;  %v617_v52 = vpack.c.bf16 %v3966_v16, %v3965_v12 }
 0x2ed   :  { %v4064_v43 = vpop.eup %4063  ;;  %v1524_v26 = vmul.f32 1.442695, %v1485_v25  ;;  %v1526_v29 = vmul.f32 1.442695, %v1486_v40 }
 0x2ee   :  { %v1414_v34 = vpop.xlane.xlu1 %1413  ;;  %v1411_v47 = vpop.xlane.xlu0 %1410  ;;  %v1580_v2 = vsel %vm629_vm1, %v4064_v43, 0.0 }
 0x2ef   :  { %4073 = vpow2.f32 %v1524_v26  ;;  %v1488_v38 = vsub.f32 %v4565_v10, %v1414_v34  ;;  %v1487_v33 = vsub.f32 %v4561_v1, %v1411_v47  ;;  %1581 = vadd.xlane.f32.xlu0 %v1580_v2  ;;  %v3970_v26 = vunpack.i.l.bf16 %v4541_v48 }
 0x2f0   :  { %4075 = vpow2.f32 %v1526_v29 }
 0x2f1   :  { %v4066_v56 = vpop.eup %4065  ;;  %v1530_v60 = vmul.f32 1.442695, %v1488_v38  ;;  %v1528_v44 = vmul.f32 1.442695, %v1487_v33 }
 0x2f2   :  { %v4068_v46 = vpop.eup %4067  ;;  %v1417_v59 = vpop.xlane.xlu0 %1416  ;;  %v1583_v36 = vsel %vm629_vm1, %v4066_v56, 0.0  ;;  %v1671_v63 = vpack.c.bf16 %v4066_v56, %v4064_v43  ;;  %v3971_v43 = vunpack.i.h.bf16 %v4541_v48 }
 0x2f3   :  { %v1420_v62 = vpop.xlane.xlu1 %1419  ;;  %4077 = vpow2.f32 %v1530_v60  ;;  %v1489_v7 = vsub.f32 %v4571_v14, %v1417_v59  ;;  %1584 = vadd.xlane.f32.xlu0 %v1583_v36  ;;  %v1586_v1 = vsel %vm629_vm1, %v4068_v46, 0.0 }
 0x2f4   :  { %v1490_v11 = vsub.f32 %v4575_v17, %v1420_v62  ;;  %4079 = vpow2.f32 %v1528_v44  ;;  %1587 = vadd.xlane.f32.xlu1 %v1586_v1  ;;  %3611 = vmatmul.mubr.msk.bf16.vlgmr.msra.gmra.mrb[40].mxu0 %vm629_vm1, %v1671_v63  ;;  %v618_v56 = vpack.c.bf16 %v3971_v43, %v3970_v26  ;;  %v3976_v44 = vunpack.i.h.bf16 %v4521_v51 }
 0x2f5   :  { %v4070_v10 = vpop.eup %4069  ;;  %v1532_v19 = vmul.f32 1.442695, %v1489_v7  ;;  %3621 = vmatpush3.bf16.msra.mxu0 %v616_v50  ;;  %3622 = vmatprep.mubr.msk.bf16.mxu0 %vm4213_vm0, %v4212_v27  ;;  %v3980_v1 = vunpack.i.l.bf16 %v4555_v61 }
 0x2f6   :  { %v1534_v55 = vmul.f32 1.442695, %v1490_v11  ;;  %v4072_v14 = vpop.eup %4071  ;;  %v1423_v21 = vpop.xlane.xlu0 %1422  ;;  %v1592_v58 = vsel %vm629_vm1, %v4070_v10, 0.0  ;;  %3632 = vmatprep.subr.bf16.mxu0 %v4212_v27  ;;  %v3981_v11 = vunpack.i.h.bf16 %v4555_v61 }
 0x2f7   :  { %v1426_v17 = vpop.xlane.xlu1 %1425  ;;  %4081 = vpow2.f32 %v1532_v19  ;;  %v1491_v40 = vsub.f32 %v4583_v22, %v1423_v21  ;;  %v1589_v37 = vsel %vm629_vm1, %v4072_v14, 0.0  ;;  %v1672_v29 = vpack.c.bf16 %v4072_v14, %v4068_v46 }
 0x2f8   :  { %v1492_v25 = vsub.f32 %v4585_v24, %v1426_v17  ;;  %4083 = vpow2.f32 %v1534_v55  ;;  %1590 = vadd.xlane.f32.xlu0 %v1589_v37  ;;  %1593 = vadd.xlane.f32.xlu1 %v1592_v58  ;;  %v3975_v46 = vunpack.i.l.bf16 %v4521_v51  ;;  %v620_v58 = vpack.c.bf16 %v3981_v11, %v3980_v1 }
 0x2f9   :  { %v4074_v30 = vpop.eup %4073  ;;  %v1536_v47 = vmul.f32 1.442695, %v1491_v40  ;;  %3617 = vmatmul.mubr.msk.bf16.vlgmr.msra.gmra.mrb[40].mxu1 %vm629_vm1, %v1672_v29 }
 0x2fa   :  { %v1538_v34 = vmul.f32 1.442695, %v1492_v25  ;;  %v4076_v2 = vpop.eup %4075  ;;  %v1432_v24 = vpop.xlane.xlu0 %1431  ;;  %v1595_v22 = vsel %vm629_vm1, %v4074_v30, 0.0  ;;  %v1673_v38 = vpack.c.bf16 %v4074_v30, %v4070_v10  ;;  %3627 = vmatpush3.bf16.msra.mxu1 %v617_v52  ;;  %3628 = vmatprep.mubr.msk.bf16.mxu1 %vm4213_vm0, %v4212_v27  ;;  %v619_v12 = vpack.c.bf16 %v3976_v44, %v3975_v46 }
 0x2fb   :  { %v1494_v33 = vsub.f32 %v4595_v35, %v1432_v24  ;;  %v1598_v48 = vsel %vm629_vm1, %v4076_v2, 0.0  ;;  %3638 = vmatprep.subr.bf16.mxu1 %v4212_v27  ;;  %v3991_v44 = vunpack.i.h.bf16 %v4573_v15 }
 0x2fc   :  { %4085 = vpow2.f32 %v1538_v34  ;;  %1596 = vadd.xlane.f32.xlu0 %v1595_v22  ;;  %1599 = vadd.xlane.f32.xlu1 %v1598_v48 }
 0x2fd   :  { %4087 = vpow2.f32 %v1536_v47  ;;  %v4078_v60 = vpop.eup %4077  ;;  %v1542_v50 = vmul.f32 1.442695, %v1494_v33  ;;  %3623 = vmatmul.mubr.msk.bf16.vlgmr.msra.gmra.mrb[44].mxu0 %vm629_vm1, %v1673_v38 }
 0x2fe   :  { %v4080_v35 = vpop.eup %4079  ;;  %3633 = vmatpush3.bf16.msra.mxu0 %v618_v56  ;;  %v1438_v59 = vpop.xlane.xlu1 %1437  ;;  %v1604_v36 = vsel %vm629_vm1, %v4078_v60, 0.0  ;;  %3634 = vmatprep.mubr.msk.bf16.mxu0 %vm4213_vm0, %v4212_v27 }
 0x2ff   :  { %v1429_v62 = vpop.xlane.xlu0 %1428  ;;  %4089 = vpow2.f32 %v1542_v50  ;;  %v1496_v63 = vsub.f32 %v4601_v45, %v1438_v59  ;;  %v1601_v51 = vsel %vm629_vm1, %v4080_v35, 0.0  ;;  %3644 = vmatprep.subr.bf16.mxu0 %v4212_v27  ;;  %v1674_v10 = vpack.c.bf16 %v4080_v35, %v4076_v2 }
 0x300   :  { %v1493_v7 = vsub.f32 %v4592_v31, %v1429_v62  ;;  %1602 = vadd.xlane.f32.xlu0 %v1601_v51  ;;  %1605 = vadd.xlane.f32.xlu1 %v1604_v36  ;;  %v621_v2 = vpack.c.bf16 %v4402_v6, %v4400_v5  ;;  %v3986_v5 = vunpack.i.h.bf16 %v4531_v41  ;;  %v3985_v6 = vunpack.i.l.bf16 %v4531_v41 }
 0x301   :  { %v4082_v16 = vpop.eup %4081  ;;  %v1546_v19 = vmul.f32 1.442695, %v1496_v63  ;;  %3629 = vmatmul.mubr.msk.bf16.vlgmr.msra.gmra.mrb[44].mxu1 %vm629_vm1, %v1674_v10  ;;  %v3990_v50 = vunpack.i.l.bf16 %v4573_v15 }
 0x302   :  { %v1540_v55 = vmul.f32 1.442695, %v1493_v7  ;;  %v4084_v14 = vpop.eup %4083  ;;  %v1607_v31 = vsel %vm629_vm1, %v4082_v16, 0.0  ;;  %v1675_v17 = vpack.c.bf16 %v4082_v16, %v4078_v60  ;;  %3639 = vmatpush3.bf16.msra.mxu1 %v619_v12  ;;  %3640 = vmatprep.mubr.msk.bf16.mxu1 %vm4213_vm0, %v4212_v27  ;;  %v622_v36 = vpack.c.bf16 %v3986_v5, %v3985_v6 }
 0x303   :  { %v1435_v45 = vpop.xlane.xlu0 %1434  ;;  %4091 = vpow2.f32 %v1546_v19  ;;  %v1610_v61 = vsel %vm629_vm1, %v4084_v14, 0.0  ;;  %3650 = vmatprep.subr.bf16.mxu1 %v4212_v27  ;;  %v623_v10 = vpack.c.bf16 %v3991_v44, %v3990_v50 }
 0x304   :  { %v1495_v21 = vsub.f32 %v4599_v42, %v1435_v45  ;;  %4093 = vpow2.f32 %v1540_v55  ;;  %1608 = vadd.xlane.f32.xlu0 %v1607_v31  ;;  %1611 = vadd.xlane.f32.xlu1 %v1610_v61  ;;  %v3996_v31 = vunpack.i.h.bf16 %v4545_v49 }
 0x305   :  { %3635 = vmatmul.mubr.msk.bf16.vlgmr.msra.gmra.mrb[48].mxu0 %vm629_vm1, %v1675_v17  ;;  %v3995_v17 = vunpack.i.l.bf16 %v4545_v49 }
 0x306   :  { %v4086_v25 = vpop.eup %4085  ;;  %v1544_v40 = vmul.f32 1.442695, %v1495_v21  ;;  %3645 = vmatpush3.bf16.msra.mxu0 %v620_v58  ;;  %3646 = vmatprep.mubr.msk.bf16.mxu0 %vm4213_vm0, %v4212_v27  ;;  %v4001_v21 = vunpack.i.h.bf16 %v4563_v4 }
 0x307   :  { %v4088_v37 = vpop.eup %4087  ;;  %v1444_v43 = vpop.xlane.xlu0 %1443  ;;  %v1616_v42 = vsel %vm629_vm1, %v4086_v25, 0.0  ;;  %3656 = vmatprep.subr.bf16.mxu0 %v4212_v27 }
 0x308   :  { %4095 = vpow2.f32 %v1544_v40  ;;  %v1498_v26 = vsub.f32 %v4609_v54, %v1444_v43  ;;  %v1613_v29 = vsel %vm629_vm1, %v4088_v37, 0.0  ;;  %v1676_v30 = vpack.c.bf16 %v4088_v37, %v4084_v14  ;;  %1617 = vadd.xlane.f32.xlu1 %v1616_v42  ;;  %v1453_v52 = vpop.xlane.xlu1 %1452 }
 0x309   :  { %1614 = vadd.xlane.f32.xlu0 %v1613_v29  ;;  %v4090_v34 = vpop.eup %4089  ;;  %v1501_v48 = vsub.f32 %v4621_v23, %v1453_v52  ;;  %v624_v29 = vpack.c.bf16 %v3996_v31, %v3995_v17 }
 0x30a   :  { %v1550_v47 = vmul.f32 1.442695, %v1498_v26  ;;  %3641 = vmatmul.mubr.msk.bf16.vlgmr.msra.gmra.mrb[48].mxu1 %vm629_vm1, %v1676_v30  ;;  %v1622_v22 = vsel %vm629_vm1, %v4090_v34, 0.0 }
 0x30b   :  { %v1441_v24 = vpop.xlane.xlu0 %1440  ;;  %3651 = vmatpush3.bf16.msra.mxu1 %v621_v2  ;;  %3652 = vmatprep.mubr.msk.bf16.mxu1 %vm4213_vm0, %v4212_v27  ;;  %v1556_v63 = vmul.f32 1.442695, %v1501_v48  ;;  %v4006_v2 = vunpack.i.h.bf16 %v4577_v18 }
 0x30c   :  { %4097 = vpow2.f32 %v1550_v47  ;;  %v1497_v54 = vsub.f32 %v4607_v53, %v1441_v24  ;;  %1623 = vadd.xlane.f32.xlu1 %v1622_v22  ;;  %v1459_v38 = vpop.xlane.xlu1 %1458  ;;  %3662 = vmatprep.subr.bf16.mxu1 %v4212_v27 }
 0x30d   :  { %v4742_v33 = vpop.eup %4091  ;;  %v1503_v7 = vsub.f32 %v4632_v32, %v1459_v38  ;;  %v4005_v38 = vunpack.i.l.bf16 %v4577_v18 }
 0x30e   :  { %v1548_v56 = vmul.f32 1.442695, %v1497_v54  ;;  %v4094_v60 = vpop.eup %4093  ;;  %v1628_v46 = vsel %vm629_vm1, %v4742_v33, 0.0 }
 0x30f   :  { %v1447_v53 = vpop.xlane.xlu0 %1446  ;;  %v1619_v59 = vsel %vm629_vm1, %v4094_v60, 0.0  ;;  %v1677_v41 = vpack.c.bf16 %v4094_v60, %v4086_v25  ;;  %v1560_v12 = vmul.f32 1.442695, %v1503_v7  ;;  %v626_v44 = vpack.c.bf16 %v4006_v2, %v4005_v38 }
 0x310   :  { %4099 = vpow2.f32 %v1548_v56  ;;  %v1499_v35 = vsub.f32 %v4615_v9, %v1447_v53  ;;  %1620 = vadd.xlane.f32.xlu0 %v1619_v59  ;;  %1629 = vadd.xlane.f32.xlu1 %v1628_v46  ;;  %v1465_v62 = vpop.xlane.xlu1 %1464 }
 0x311   :  { %3647 = vmatmul.mubr.msk.bf16.vlgmr.msra.gmra.mrb[52].mxu0 %vm629_vm1, %v1677_v41  ;;  %v1505_v19 = vsub.f32 %v4641_v39, %v1465_v62 }
 0x312   :  { %v4096_v23 = vpop.eup %4095  ;;  %v1552_v51 = vmul.f32 1.442695, %v1499_v35  ;;  %3657 = vmatpush3.bf16.msra.mxu0 %v622_v36  ;;  %3658 = vmatprep.mubr.msk.bf16.mxu0 %vm4213_vm0, %v4212_v27 }
 0x313   :  { %v1450_v11 = vpop.xlane.xlu0 %1449  ;;  %v1625_v15 = vsel %vm629_vm1, %v4096_v23, 0.0  ;;  %v1678_v1 = vpack.c.bf16 %v4096_v23, %v4090_v34  ;;  %3668 = vmatprep.subr.bf16.mxu0 %v4212_v27  ;;  %v1564_v25 = vmul.f32 1.442695, %v1505_v19 }
 0x314   :  { %4101 = vpow2.f32 %v1552_v51  ;;  %v1500_v9 = vsub.f32 %v4617_v13, %v1450_v11  ;;  %1626 = vadd.xlane.f32.xlu0 %v1625_v15  ;;  %v1471_v16 = vpop.xlane.xlu1 %1470 }
 0x315   :  { %3653 = vmatmul.mubr.msk.bf16.vlgmr.msra.gmra.mrb[52].mxu1 %vm629_vm1, %v1678_v1  ;;  %4103 = vpow2.f32 %v1556_v63  ;;  %v1507_v14 = vsub.f32 %v4649_v57, %v1471_v16  ;;  %v4000_v57 = vunpack.i.l.bf16 %v4563_v4 }
 0x316   :  { %v4098_v32 = vpop.eup %4097  ;;  %v1554_v55 = vmul.f32 1.442695, %v1500_v9  ;;  %3663 = vmatpush3.bf16.msra.mxu1 %v623_v10  ;;  %3664 = vmatprep.mubr.msk.bf16.mxu1 %vm4213_vm0, %v4212_v27 }
 0x317   :  { %v1456_v45 = vpop.xlane.xlu0 %1455  ;;  %v1634_v13 = vsel %vm629_vm1, %v4098_v32, 0.0  ;;  %3674 = vmatprep.subr.bf16.mxu1 %v4212_v27  ;;  %v1568_v43 = vmul.f32 1.442695, %v1507_v14  ;;  %v625_v34 = vpack.c.bf16 %v4001_v21, %v4000_v57 }
 0x318   :  { %4105 = vpow2.f32 %v1554_v55  ;;  %v1502_v39 = vsub.f32 %v4626_v28, %v1456_v45  ;;  %1635 = vadd.xlane.f32.xlu1 %v1634_v13  ;;  %v1474_v61 = vpop.xlane.xlu1 %1473  ;;  %v4809_v55 = vld [vmem:[%s4949_s3] sm:$0xff]  }
 0x319   :  { %4107 = vpow2.f32 %v1560_v12  ;;  %v1508_v37 = vsub.f32 %v4653_v0, %v1474_v61 }
 0x31a   :  { %v4100_v58 = vpop.eup %4099  ;;  %v1558_v40 = vmul.f32 1.442695, %v1502_v39  ;;  %v4827_v39 = vld [vmem:[%s4949_s3 + $0x8] sm:$0xff]  }
 0x31b   :  { %v1462_v42 = vpop.xlane.xlu0 %1461  ;;  %v1631_v26 = vsel %vm629_vm1, %v4100_v58, 0.0  ;;  %v1679_v49 = vpack.c.bf16 %v4100_v58, %v4742_v33  ;;  %v1570_v30 = vmul.f32 1.442695, %v1508_v37 }
 0x31c   :  { %4109 = vpow2.f32 %v1558_v40  ;;  %v1504_v28 = vsub.f32 %v4637_v8, %v1462_v42  ;;  %1632 = vadd.xlane.f32.xlu0 %v1631_v26  ;;  %v1477_v4 = vpop.xlane.xlu1 %1476 }
 0x31d   :  { %3659 = vmatmul.mubr.msk.bf16.vlgmr.msra.gmra.mrb[56].mxu0 %vm629_vm1, %v1679_v49  ;;  %4111 = vpow2.f32 %v1564_v25  ;;  %v1509_v0 = vsub.f32 %v4657_v20, %v1477_v4  ;;  %v4834_v49 = vld [vmem:[%s4949_s3 + $0x10] sm:$0xff]  }
 0x31e   :  { %v4102_v52 = vpop.eup %4101  ;;  %v1562_v47 = vmul.f32 1.442695, %v1504_v28  ;;  %3669 = vmatpush3.bf16.msra.mxu0 %v624_v29  ;;  %3670 = vmatprep.mubr.msk.bf16.mxu0 %vm4213_vm0, %v4212_v27  ;;  %4113 = vpow2.f32 %v1568_v43 }
 0x31f   :  { %v1468_v24 = vpop.xlane.xlu0 %1467  ;;  %v1637_v8 = vsel %vm629_vm1, %v4102_v52, 0.0  ;;  %v1680_v22 = vpack.c.bf16 %v4102_v52, %v4098_v32  ;;  %3680 = vmatprep.subr.bf16.mxu0 %v4212_v27  ;;  %v4104_v54 = vpop.eup %4103  ;;  %v1572_v33 = vmul.f32 1.442695, %v1509_v0 }
 0x320   :  { %4115 = vpow2.f32 %v1562_v47  ;;  %v1506_v5 = vsub.f32 %v4645_v3, %v1468_v24  ;;  %1638 = vadd.xlane.f32.xlu0 %v1637_v8  ;;  %v1643_v56 = vsel %vm629_vm1, %v4104_v54, 0.0  ;;  %v4014_v50 = vpop.permute.xlu1 %4013 }
 0x321   :  { %4117 = vpow2.f32 %v1570_v30  ;;  %3665 = vmatmul.mubr.msk.bf16.vlgmr.msra.gmra.mrb[56].mxu1 %vm629_vm1, %v1680_v22  ;;  %v4016_v63 = vunpack.i.h.bf16 %v4014_v50  ;;  %v4015_v7 = vunpack.i.l.bf16 %v4014_v50 }
 0x322   :  { %v4106_v20 = vpop.eup %4105  ;;  %4119 = vpow2.f32 %v1572_v33  ;;  %v1566_v6 = vmul.f32 1.442695, %v1506_v5  ;;  %3675 = vmatpush3.bf16.msra.mxu1 %v625_v34  ;;  %3676 = vmatprep.mubr.msk.bf16.mxu1 %vm4213_vm0, %v4212_v27 }
 0x323   :  { %v4009_v48 = vpop.permute.xlu0 %4008  ;;  %v1640_v18 = vsel %vm629_vm1, %v4106_v20, 0.0  ;;  %v1681_v60 = vpack.c.bf16 %v4104_v54, %v4106_v20  ;;  %3686 = vmatprep.subr.bf16.mxu1 %v4212_v27  ;;  %v4108_v3 = vpop.eup %4107  ;;  %v628_v32 = vpack.c.bf16 %v4016_v63, %v4015_v7 }
 0x324   :  { %4121 = vpow2.f32 %v1566_v6  ;;  %v4011_v53 = vunpack.i.h.bf16 %v4009_v48  ;;  %v4010_v46 = vunpack.i.l.bf16 %v4009_v48  ;;  %1644 = vadd.xlane.f32.xlu0 %v1643_v56  ;;  %1641 = vadd.xlane.f32.xlu1 %v1640_v18  ;;  %v1649_v41 = vsel %vm629_vm1, %v4108_v3, 0.0 }
 0x325   :  { %3671 = vmatmul.mubr.msk.bf16.vlgmr.msra.gmra.mrb[60].mxu0 %vm629_vm1, %v1681_v60  ;;  %v4844_v60 = vld [vmem:[%s4949_s3 + $0x18] sm:$0xff]  }
 0x326   :  { %v4110_v35 = vpop.eup %4109  ;;  %v627_v59 = vpack.c.bf16 %v4011_v53, %v4010_v46  ;;  %3681 = vmatpush3.bf16.msra.mxu0 %v626_v44  ;;  %3682 = vmatprep.mubr.msk.bf16.mxu0 %vm4213_vm0, %v4212_v27 }
 0x327   :  { %v1646_v62 = vsel %vm629_vm1, %v4110_v35, 0.0  ;;  %v1682_v23 = vpack.c.bf16 %v4108_v3, %v4110_v35  ;;  %3692 = vmatprep.subr.bf16.mxu0 %v4212_v27  ;;  %v4112_v36 = vpop.eup %4111 }
 0x328   :  { %1650 = vadd.xlane.f32.xlu0 %v1649_v41  ;;  %1647 = vadd.xlane.f32.xlu1 %v1646_v62  ;;  %v4114_v51 = vpop.eup %4113  ;;  %v1655_v1 = vsel %vm629_vm1, %v4112_v36, 0.0 }
 0x329   :  { %3677 = vmatmul.mubr.msk.bf16.vlgmr.msra.gmra.mrb[60].mxu1 %vm629_vm1, %v1682_v23  ;;  %v1661_v45 = vsel %vm629_vm1, %v4114_v51, 0.0 }
 0x32a   :  { %v4116_v11 = vpop.eup %4115  ;;  %3687 = vmatpush3.bf16.msra.mxu1 %v627_v59  ;;  %3688 = vmatprep.mubr.msk.bf16.mxu1 %vm4213_vm0, %v4212_v27 }
 0x32b   :  { %v4118_v15 = vpop.eup %4117  ;;  %v1652_v10 = vsel %vm629_vm1, %v4116_v11, 0.0  ;;  %v1683_v9 = vpack.c.bf16 %v4112_v36, %v4116_v11  ;;  %3698 = vmatprep.subr.bf16.mxu1 %v4212_v27  ;;  %v4854_v11 = vld [vmem:[%s4949_s3 + $0x20] sm:$0xff]  }
 0x32c   :  { %v4120_v16 = vpop.eup %4119  ;;  %1656 = vadd.xlane.f32.xlu0 %v1655_v1  ;;  %1653 = vadd.xlane.f32.xlu1 %v1652_v10  ;;  %v1664_v31 = vsel %vm629_vm1, %v4118_v15, 0.0 }
 0x32d   :  { %3683 = vmatmul.mubr.msk.bf16.vlgmr.msra.gmra.mrb[64].mxu0 %vm629_vm1, %v1683_v9  ;;  %v1685_v12 = vpack.c.bf16 %v4120_v16, %v4118_v15  ;;  %v1667_v17 = vsel %vm629_vm1, %v4120_v16, 0.0 }
 0x32e   :  { %v4122_v19 = vpop.eup %4121  ;;  %3693 = vmatpush3.bf16.msra.mxu0 %v628_v32  ;;  %3694 = vmatprep.mubr.msk.bf16.mxu0 %vm4213_vm0, %v4212_v27 }
 0x32f   :  { %v1658_v14 = vsel %vm629_vm1, %v4122_v19, 0.0  ;;  %v1684_v13 = vpack.c.bf16 %v4114_v51, %v4122_v19  ;;  %3704 = vmatprep.subr.bf16.mxu0 %v4212_v27  ;;  %v4860_v19 = vld [vmem:[%s4949_s3 + $0x28] sm:$0xff]  }
 0x330   :  { %1659 = vadd.xlane.f32.xlu1 %v1658_v14  ;;  %1662 = vadd.xlane.f32.xlu0 %v1661_v45 }
 0x331   :  { %3689 = vmatmul.mubr.msk.bf16.vlgmr.msra.gmra.mrb[64].mxu1 %vm629_vm1, %v1684_v13 }
 0x332   :  { %3699 = vmatpush3.bf16.msra.mxu1 %v4809_v55  ;;  %3700 = vmatprep.mubr.msk.bf16.mxu1 %vm4213_vm0, %v4212_v27 }
 0x333   :  { %3710 = vmatprep.subr.bf16.mxu1 %v4212_v27 }
 0x334   :  { %1665 = vadd.xlane.f32.xlu1 %v1664_v31  ;;  %1668 = vadd.xlane.f32.xlu0 %v1667_v17 }
 0x335   :  { %3695 = vmatmul.mubr.msk.bf16.vlgmr.msra.gmra.mrb[68].mxu0 %vm629_vm1, %v1685_v12 }
 0x336   :  { %3706 = vmatprep.mubr.msk.bf16.mxu0 %vm4213_vm0, %v4212_v27  ;;  %3705 = vmatpush3.bf16.msra.mxu0 %v4827_v39 }
 0x337   :  { %3716 = vmatprep.subr.bf16.mxu0 %v4212_v27 }
 0x34e   :  { %v1723_v21 = vpop.f32.mrb[36].mxu1 }
 0x34f   :  { %v3606_v57 = vpop.f32.mrb[37].mxu1 }
 0x350   :  { %v1726_v61 = vpop.f32.mrb[38].mxu1 }
 0x351   :  { %v1579_v58 = vpop.xlane.xlu1 %1578  ;;  %v3607_v25 = vpop.f32.mrb[39].mxu1 }
 0x352   :  { %4123 = vrcp.f32 %v1579_v58 }
 0x353   :  { %v1576_v40 = vpop.xlane.xlu0 %1575 }
 0x354   :  { %4125 = vrcp.f32 %v1576_v40 }
 0x35c   :  { %v4124_v37 = vpop.eup %4123 }
 0x35d   :  { %v2423_v42 = vmul.f32 %v4124_v37, %v1726_v61 }
 0x35e   :  { %v4126_v43 = vpop.eup %4125 }
 0x35f   :  { %v2422_v26 = vmul.f32 %v4126_v43, %v1723_v21 }
 0x361   :  { %v2454_v29 = vpack.c.bf16 %v2423_v42, %v2422_v26  ;;  %v4873_v26 = vld [vmem:[%s4949_s3 + $0x30] sm:$0xff]  }
 0x363   :  { %3701 = vmatmul.mubr.msk.bf16.vlgmr.msra.gmra.mrb[68].mxu1 %vm629_vm1, %v2454_v29 }
 0x364   :  { %3711 = vmatpush3.bf16.msra.mxu1 %v4834_v49  ;;  %3712 = vmatprep.mubr.msk.bf16.mxu1 %vm4213_vm0, %v4212_v27 }
 0x365   :  { %3722 = vmatprep.subr.bf16.mxu1 %v4212_v27 }
 0x37c   :  { %v1582_v28 = vpop.xlane.xlu0 %1581 }
 0x37d   :  { %4127 = vrcp.f32 %v1582_v28 }
 0x380   :  { %v1585_v30 = vpop.xlane.xlu0 %1584 }
 0x381   :  { %v1588_v4 = vpop.xlane.xlu1 %1587  ;;  %4129 = vrcp.f32 %v1585_v30 }
 0x382   :  { %4131 = vrcp.f32 %v1588_v4 }
 0x385   :  { %v1591_v52 = vpop.xlane.xlu0 %1590  ;;  %v1594_v34 = vpop.xlane.xlu1 %1593 }
 0x386   :  { %4133 = vrcp.f32 %v1591_v52 }
 0x387   :  { %4135 = vrcp.f32 %v1594_v34  ;;  %v4128_v54 = vpop.eup %4127 }
 0x389   :  { %v1597_v47 = vpop.xlane.xlu0 %1596  ;;  %v1600_v0 = vpop.xlane.xlu1 %1599 }
 0x38a   :  { %4137 = vrcp.f32 %v1597_v47 }
 0x38b   :  { %v4130_v5 = vpop.eup %4129  ;;  %4139 = vrcp.f32 %v1600_v0  ;;  %v4880_v0 = vld [vmem:[%s4949_s3 + $0x38] sm:$0xff]  }
 0x38c   :  { %v4132_v46 = vpop.eup %4131 }
 0x38d   :  { %v1603_v2 = vpop.xlane.xlu0 %1602  ;;  %v1606_v24 = vpop.xlane.xlu1 %1605 }
 0x38e   :  { %4141 = vrcp.f32 %v1603_v2 }
 0x38f   :  { %4143 = vrcp.f32 %v1606_v24 }
 0x390   :  { %v4134_v35 = vpop.eup %4133 }
 0x391   :  { %v1609_v8 = vpop.xlane.xlu0 %1608  ;;  %v1612_v38 = vpop.xlane.xlu1 %1611 }
 0x392   :  { %4145 = vrcp.f32 %v1609_v8  ;;  %v4136_v7 = vpop.eup %4135 }
 0x393   :  { %4147 = vrcp.f32 %v1612_v38 }
 0x394   :  { %v4138_v15 = vpop.eup %4137 }
 0x395   :  { %v1618_v59 = vpop.xlane.xlu1 %1617  ;;  %v4140_v13 = vpop.eup %4139 }
 0x396   :  { %v1615_v20 = vpop.xlane.xlu0 %1614 }
 0x397   :  { %4149 = vrcp.f32 %v1615_v20 }
 0x398   :  { %v4142_v21 = vpop.eup %4141  ;;  %4151 = vrcp.f32 %v1618_v59 }
 0x399   :  { %v1624_v31 = vpop.xlane.xlu1 %1623  ;;  %v4144_v43 = vpop.eup %4143 }
 0x39c   :  { %v4146_v29 = vpop.eup %4145 }
 0x39d   :  { %v1621_v44 = vpop.xlane.xlu0 %1620  ;;  %v1630_v47 = vpop.xlane.xlu1 %1629 }
 0x39e   :  { %4153 = vrcp.f32 %v1621_v44 }
 0x39f   :  { %4155 = vrcp.f32 %v1624_v31 }
 0x3a1   :  { %v1627_v9 = vpop.xlane.xlu0 %1626 }
 0x3a2   :  { %4157 = vrcp.f32 %v1627_v9 }
 0x3a3   :  { %4159 = vrcp.f32 %v1630_v47 }
 0x3a9   :  { %v1633_v57 = vpop.xlane.xlu0 %1632 }
 0x3aa   :  { %4161 = vrcp.f32 %v1633_v57 }
 0x3ad   :  { %v1639_v2 = vpop.xlane.xlu0 %1638 }
 0x3c7   :  { %v1767_v22 = vpop.f32.mrb[40].mxu0 }
 0x3c8   :  { %v3612_v33 = vpop.f32.mrb[41].mxu0  ;;  %v2424_v48 = vmul.f32 %v4128_v54, %v1767_v22  ;;  %v4148_v22 = vpop.eup %4147 }
 0x3c9   :  { %v1770_v6 = vpop.f32.mrb[42].mxu0  ;;  %v4150_v38 = vpop.eup %4149 }
 0x3ca   :  { %v2425_v56 = vmul.f32 %v4130_v5, %v1770_v6  ;;  %v3613_v18 = vpop.f32.mrb[43].mxu0  ;;  %v1636_v5 = vpop.xlane.xlu1 %1635 }
 0x3cb   :  { %v1645_v18 = vpop.xlane.xlu0 %1644  ;;  %4163 = vrcp.f32 %v1636_v5 }
 0x3cc   :  { %v2455_v3 = vpack.c.bf16 %v2425_v56, %v2424_v48  ;;  %v1811_v53 = vpop.f32.mrb[40].mxu1  ;;  %4165 = vrcp.f32 %v1639_v2 }
 0x3cd   :  { %v3618_v50 = vpop.f32.mrb[41].mxu1  ;;  %v2426_v62 = vmul.f32 %v4132_v46, %v1811_v53  ;;  %v4152_v53 = vpop.eup %4151  ;;  %4167 = vrcp.f32 %v1645_v18 }
 0x3ce   :  { %3707 = vmatmul.mubr.msk.bf16.vlgmr.msra.gmra.mrb[72].mxu0 %vm629_vm1, %v2455_v3  ;;  %v1814_v41 = vpop.f32.mrb[42].mxu1  ;;  %v1642_v3 = vpop.xlane.xlu1 %1641 }
 0x3cf   :  { %3717 = vmatpush3.bf16.msra.mxu0 %v4844_v60  ;;  %3718 = vmatprep.mubr.msk.bf16.mxu0 %vm4213_vm0, %v4212_v27  ;;  %v2427_v23 = vmul.f32 %v4134_v35, %v1814_v41  ;;  %v3619_v36 = vpop.f32.mrb[43].mxu1  ;;  %v4154_v50 = vpop.eup %4153  ;;  %4169 = vrcp.f32 %v1642_v3 }
 0x3d0   :  { %v1855_v63 = vpop.f32.mrb[44].mxu0  ;;  %3728 = vmatprep.subr.bf16.mxu0 %v4212_v27  ;;  %v4156_v41 = vpop.eup %4155 }
 0x3d1   :  { %v3624_v51 = vpop.f32.mrb[45].mxu0  ;;  %v2456_v1 = vpack.c.bf16 %v2427_v23, %v2426_v62  ;;  %v2428_v16 = vmul.f32 %v4136_v7, %v1855_v63  ;;  %v4158_v7 = vpop.eup %4157 }
 0x3d2   :  { %v1858_v10 = vpop.f32.mrb[46].mxu0  ;;  %v1651_v51 = vpop.xlane.xlu0 %1650 }
 0x3d3   :  { %v2429_v32 = vmul.f32 %v4138_v15, %v1858_v10  ;;  %v3625_v12 = vpop.f32.mrb[47].mxu0  ;;  %3713 = vmatmul.mubr.msk.bf16.vlgmr.msra.gmra.mrb[72].mxu1 %vm629_vm1, %v2456_v1  ;;  %v1648_v15 = vpop.xlane.xlu1 %1647  ;;  %4171 = vrcp.f32 %v1651_v51 }
 0x3d4   :  { %v1899_v45 = vpop.f32.mrb[44].mxu1  ;;  %3723 = vmatpush3.bf16.msra.mxu1 %v4854_v11  ;;  %3724 = vmatprep.mubr.msk.bf16.mxu1 %vm4213_vm0, %v4212_v27  ;;  %4173 = vrcp.f32 %v1648_v15 }
 0x3d5   :  { %v2457_v14 = vpack.c.bf16 %v2429_v32, %v2428_v16  ;;  %v3630_v17 = vpop.f32.mrb[45].mxu1  ;;  %3734 = vmatprep.subr.bf16.mxu1 %v4212_v27  ;;  %v2430_v58 = vmul.f32 %v4140_v13, %v1899_v45  ;;  %v4160_v45 = vpop.eup %4159 }
 0x3d6   :  { %v1902_v61 = vpop.f32.mrb[46].mxu1  ;;  %v1657_v12 = vpop.xlane.xlu0 %1656 }
 0x3d7   :  { %3719 = vmatmul.mubr.msk.bf16.vlgmr.msra.gmra.mrb[76].mxu0 %vm629_vm1, %v2457_v14  ;;  %v2431_v25 = vmul.f32 %v4142_v21, %v1902_v61  ;;  %v3631_v40 = vpop.f32.mrb[47].mxu1  ;;  %v1654_v13 = vpop.xlane.xlu1 %1653  ;;  %4175 = vrcp.f32 %v1657_v12 }
 0x3d8   :  { %v1943_v37 = vpop.f32.mrb[48].mxu0  ;;  %3729 = vmatpush3.bf16.msra.mxu0 %v4860_v19  ;;  %3730 = vmatprep.mubr.msk.bf16.mxu0 %vm4213_vm0, %v4212_v27  ;;  %4177 = vrcp.f32 %v1654_v13 }
 0x3d9   :  { %v3636_v42 = vpop.f32.mrb[49].mxu0  ;;  %3740 = vmatprep.subr.bf16.mxu0 %v4212_v27  ;;  %v2458_v28 = vpack.c.bf16 %v2431_v25, %v2430_v58  ;;  %v2432_v4 = vmul.f32 %v4144_v43, %v1943_v37 }
 0x3da   :  { %v1946_v30 = vpop.f32.mrb[50].mxu0  ;;  %v1663_v43 = vpop.xlane.xlu0 %1662 }
 0x3db   :  { %v2433_v52 = vmul.f32 %v4146_v29, %v1946_v30  ;;  %v3637_v34 = vpop.f32.mrb[51].mxu0  ;;  %3725 = vmatmul.mubr.msk.bf16.vlgmr.msra.gmra.mrb[76].mxu1 %vm629_vm1, %v2458_v28  ;;  %v1660_v29 = vpop.xlane.xlu1 %1659  ;;  %4179 = vrcp.f32 %v1663_v43 }
 0x3dc   :  { %3735 = vmatpush3.bf16.msra.mxu1 %v4873_v26  ;;  %3736 = vmatprep.mubr.msk.bf16.mxu1 %vm4213_vm0, %v4212_v27  ;;  %4181 = vrcp.f32 %v1660_v29 }
 0x3dd   :  { %v2459_v24 = vpack.c.bf16 %v2433_v52, %v2432_v4  ;;  %v1987_v8 = vpop.f32.mrb[48].mxu1  ;;  %3746 = vmatprep.subr.bf16.mxu1 %v4212_v27 }
 0x3de   :  { %v3642_v54 = vpop.f32.mrb[49].mxu1  ;;  %v2434_v20 = vmul.f32 %v4148_v22, %v1987_v8 }
 0x3df   :  { %v1990_v33 = vpop.f32.mrb[50].mxu1  ;;  %3731 = vmatmul.mubr.msk.bf16.vlgmr.msra.gmra.mrb[80].mxu0 %vm629_vm1, %v2459_v24 }
 0x3e0   :  { %v2435_v6 = vmul.f32 %v4150_v38, %v1990_v33  ;;  %v3643_v48 = vpop.f32.mrb[51].mxu1  ;;  %3741 = vmatpush3.bf16.msra.mxu0 %v4880_v0  ;;  %3742 = vmatprep.mubr.msk.bf16.mxu0 %vm4213_vm0, %v4212_v27  ;;  %v1669_v33 = vpop.xlane.xlu0 %1668 }
 0x3e1   :  { %3752 = vmatprep.subr.bf16.mxu0 %v4212_v27  ;;  %4183 = vrcp.f32 %v1669_v33 }
 0x3e2   :  { %v2460_v56 = vpack.c.bf16 %v2435_v6, %v2434_v20  ;;  %v1666_v20 = vpop.xlane.xlu1 %1665 }
 0x3e3   :  { %4185 = vrcp.f32 %v1666_v20 }
 0x3e4   :  { %3737 = vmatmul.mubr.msk.bf16.vlgmr.msra.gmra.mrb[80].mxu1 %vm629_vm1, %v2460_v56  ;;  %v2031_v44 = vpop.f32.mrb[52].mxu0 }
 0x3e5   :  { %3747 = vmatpush3.bf16.msra.mxu1 %v4809_v55  ;;  %3748 = vmatprep.mubr.msk.bf16.mxu1 %vm4213_vm0, %v4212_v27  ;;  %v3648_v46 = vpop.f32.mrb[53].mxu0  ;;  %v2436_v62 = vmul.f32 %v4152_v53, %v2031_v44 }
 0x3e6   :  { %3758 = vmatprep.subr.bf16.mxu1 %v4212_v27  ;;  %v2034_v35 = vpop.f32.mrb[54].mxu0 }
 0x3e7   :  { %v2437_v23 = vmul.f32 %v4154_v50, %v2034_v35  ;;  %v3649_v36 = vpop.f32.mrb[55].mxu0 }
 0x3e8   :  { %v2075_v59 = vpop.f32.mrb[52].mxu1 }
 0x3e9   :  { %v3654_v63 = vpop.f32.mrb[53].mxu1  ;;  %v2461_v1 = vpack.c.bf16 %v2437_v23, %v2436_v62  ;;  %v2438_v10 = vmul.f32 %v4156_v41, %v2075_v59 }
 0x3ea   :  { %v2078_v55 = vpop.f32.mrb[54].mxu1 }
 0x3eb   :  { %v2439_v9 = vmul.f32 %v4158_v7, %v2078_v55  ;;  %v3655_v16 = vpop.f32.mrb[55].mxu1  ;;  %3743 = vmatmul.mubr.msk.bf16.vlgmr.msra.gmra.mrb[84].mxu0 %vm629_vm1, %v2461_v1 }
 0x3ec   :  { %3753 = vmatpush3.bf16.msra.mxu0 %v4827_v39  ;;  %3754 = vmatprep.mubr.msk.bf16.mxu0 %vm4213_vm0, %v4212_v27  ;;  %v4162_v39 = vpop.eup %4161 }
 0x3ed   :  { %v2462_v32 = vpack.c.bf16 %v2439_v9, %v2438_v10  ;;  %3764 = vmatprep.subr.bf16.mxu0 %v4212_v27  ;;  %v4164_v25 = vpop.eup %4163 }
 0x3ef   :  { %3749 = vmatmul.mubr.msk.bf16.vlgmr.msra.gmra.mrb[84].mxu1 %vm629_vm1, %v2462_v32 }
 0x3f0   :  { %v2119_v14 = vpop.f32.mrb[56].mxu0  ;;  %3759 = vmatpush3.bf16.msra.mxu1 %v4834_v49  ;;  %3760 = vmatprep.mubr.msk.bf16.mxu1 %vm4213_vm0, %v4212_v27  ;;  %v4166_v49 = vpop.eup %4165 }
 0x3f1   :  { %v3660_v31 = vpop.f32.mrb[57].mxu0  ;;  %3770 = vmatprep.subr.bf16.mxu1 %v4212_v27  ;;  %v2440_v21 = vmul.f32 %v4160_v45, %v2119_v14  ;;  %v4168_v34 = vpop.eup %4167 }
 0x3f2   :  { %v2122_v17 = vpop.f32.mrb[58].mxu0  ;;  %v4170_v24 = vpop.eup %4169 }
 0x3f3   :  { %v2441_v57 = vmul.f32 %v4162_v39, %v2122_v17  ;;  %v3661_v61 = vpop.f32.mrb[59].mxu0 }
 0x3f4   :  { %v2163_v58 = vpop.f32.mrb[56].mxu1 }
 0x3f5   :  { %v2463_v40 = vpack.c.bf16 %v2441_v57, %v2440_v21  ;;  %v3666_v37 = vpop.f32.mrb[57].mxu1  ;;  %v2442_v28 = vmul.f32 %v4164_v25, %v2163_v58 }
 0x3f6   :  { %v2166_v42 = vpop.f32.mrb[58].mxu1 }
 0x3f7   :  { %v2443_v30 = vmul.f32 %v4166_v49, %v2166_v42  ;;  %v3667_v4 = vpop.f32.mrb[59].mxu1  ;;  %3755 = vmatmul.mubr.msk.bf16.vlgmr.msra.gmra.mrb[88].mxu0 %vm629_vm1, %v2463_v40 }
 0x3f8   :  { %v2207_v52 = vpop.f32.mrb[60].mxu0  ;;  %3765 = vmatpush3.bf16.msra.mxu0 %v4844_v60  ;;  %3766 = vmatprep.mubr.msk.bf16.mxu0 %vm4213_vm0, %v4212_v27  ;;  %v4172_v60 = vpop.eup %4171 }
 0x3f9   :  { %v2464_v47 = vpack.c.bf16 %v2443_v30, %v2442_v28  ;;  %v3672_v2 = vpop.f32.mrb[61].mxu0  ;;  %3776 = vmatprep.subr.bf16.mxu0 %v4212_v27  ;;  %v2444_v22 = vmul.f32 %v4170_v24, %v2207_v52  ;;  %v4174_v56 = vpop.eup %4173 }
 0x3fa   :  { %v2210_v8 = vpop.f32.mrb[62].mxu0 }
 0x3fb   :  { %v2445_v54 = vmul.f32 %v4168_v34, %v2210_v8  ;;  %v3673_v38 = vpop.f32.mrb[63].mxu0  ;;  %3761 = vmatmul.mubr.msk.bf16.vlgmr.msra.gmra.mrb[88].mxu1 %vm629_vm1, %v2464_v47 }
 0x3fc   :  { %v2251_v5 = vpop.f32.mrb[60].mxu1  ;;  %3771 = vmatpush3.bf16.msra.mxu1 %v4854_v11  ;;  %3772 = vmatprep.mubr.msk.bf16.mxu1 %vm4213_vm0, %v4212_v27  ;;  %v4176_v11 = vpop.eup %4175 }
 0x3fd   :  { %v2465_v6 = vpack.c.bf16 %v2445_v54, %v2444_v22  ;;  %v3678_v48 = vpop.f32.mrb[61].mxu1  ;;  %3782 = vmatprep.subr.bf16.mxu1 %v4212_v27  ;;  %v2446_v3 = vmul.f32 %v4174_v56, %v2251_v5  ;;  %v4178_v59 = vpop.eup %4177 }
 0x3fe   :  { %v2254_v18 = vpop.f32.mrb[62].mxu1 }
 0x3ff   :  { %v2447_v44 = vmul.f32 %v4172_v60, %v2254_v18  ;;  %v3679_v53 = vpop.f32.mrb[63].mxu1  ;;  %3767 = vmatmul.mubr.msk.bf16.vlgmr.msra.gmra.mrb[92].mxu0 %vm629_vm1, %v2465_v6 }
 0x400   :  { %v2295_v46 = vpop.f32.mrb[64].mxu0  ;;  %3777 = vmatpush3.bf16.msra.mxu0 %v4860_v19  ;;  %3778 = vmatprep.mubr.msk.bf16.mxu0 %vm4213_vm0, %v4212_v27  ;;  %v4180_v19 = vpop.eup %4179 }
 0x401   :  { %v2466_v50 = vpack.c.bf16 %v2447_v44, %v2446_v3  ;;  %v3684_v35 = vpop.f32.mrb[65].mxu0  ;;  %3788 = vmatprep.subr.bf16.mxu0 %v4212_v27  ;;  %v2448_v62 = vmul.f32 %v4178_v59, %v2295_v46  ;;  %v4182_v55 = vpop.eup %4181 }
 0x402   :  { %v2298_v41 = vpop.f32.mrb[66].mxu0 }
 0x403   :  { %v2449_v23 = vmul.f32 %v4176_v11, %v2298_v41  ;;  %v3685_v36 = vpop.f32.mrb[67].mxu0  ;;  %3773 = vmatmul.mubr.msk.bf16.vlgmr.msra.gmra.mrb[92].mxu1 %vm629_vm1, %v2466_v50  ;;  %v3379_v41 = vld [vmem:[%s4950_s4] ss:$0 sm:$0xff]  ;;  %s4221_s4 = smov [#allocation2]  }
 0x404   :  { %v2339_v63 = vpop.f32.mrb[64].mxu1  ;;  %3783 = vmatpush3.bf16.msra.mxu1 %v4873_v26  ;;  %3784 = vmatprep.mubr.msk.bf16.mxu1 %vm4213_vm0, %v4212_v27  ;;  %v4184_v26 = vpop.eup %4183  ;;  %s3286_s18 = sshll.u32 %s4221_s4, 4  ;;  %s3287_s18 = int_to_ptr.vmem [resolvable:$true] %s3286_s18 }
 0x405   :  { %v2467_v7 = vpack.c.bf16 %v2449_v23, %v2448_v62  ;;  %v3690_v51 = vpop.f32.mrb[65].mxu1  ;;  %v2450_v1 = vmul.f32 %v4182_v55, %v2339_v63  ;;  %v4186_v14 = vpop.eup %4185  ;;  %s4187_s19 = scalar_lea.vmem %s3287_s18, 512  ;;  %p4192_p1 = scmp.lt.s32.totalorder %s3287_s18, %s3287_s18 }
 0x406   :  { %v2342_v15 = vpop.f32.mrb[66].mxu1  ;;  %p4188_p0 = scmp.ne.s32.totalorder %s3287_s18, %s4187_s19  ;;  %p4193_p2 = scmp.lt.s32.totalorder %s4187_s19, %s4187_s19 }
 0x407   :  { %v2451_v10 = vmul.f32 %v4180_v19, %v2342_v15  ;;  %v3691_v9 = vpop.f32.mrb[67].mxu1  ;;  %3779 = vmatmul.mubr.msk.bf16.vlgmr.msra.gmra.mrb[96].mxu0 %vm629_vm1, %v2467_v7 }
 0x408   :  { %v2383_v16 = vpop.f32.mrb[68].mxu0  ;;  %3789 = vmatpush3.bf16.msra.mxu0 %v4880_v0  ;;  %3790 = vmatprep.mubr.msk.bf16.mxu0 %vm4213_vm0, %v4212_v27  ;;  %p4194_p3 = por %p4193_p2, %p4192_p1 }
 0x409   :  { %v2468_v32 = vpack.c.bf16 %v2451_v10, %v2450_v1  ;;  %v3696_v12 = vpop.f32.mrb[69].mxu0  ;;  %v2452_v13 = vmul.f32 %v4186_v14, %v2383_v16 }
 0x40a   :  { %v2386_v45 = vpop.f32.mrb[70].mxu0  ;;  %p4195_p4 = pnand %p4194_p3, %p4188_p0 }
 0x40b   :  { %v2453_v31 = vmul.f32 %v4184_v26, %v2386_v45  ;;  %v3697_v39 = vpop.f32.mrb[71].mxu0  ;;  %3785 = vmatmul.mubr.msk.bf16.vlgmr.msra.gmra.mrb[96].mxu1 %vm629_vm1, %v2468_v32 }
 0x40d   :  { %v2469_v17 = vpack.c.bf16 %v2453_v31, %v2452_v13 }
 0x40f   :  { %3791 = vmatmul.mubr.msk.bf16.vlgmr.msra.gmra.mrb[100].mxu0 %vm629_vm1, %v2469_v17 }
 0x436   :  { %v2529_v21 = vpop.f32.mrb[68].mxu1 }
 0x437   :  { %v3702_v57 = vpop.f32.mrb[69].mxu1 }
 0x438   :  { %v2532_v61 = vpop.f32.mrb[70].mxu1 }
 0x439   :  { %v3703_v0 = vpop.f32.mrb[71].mxu1 }
 0x4a1   :  { %v2579_v58 = vpop.f32.mrb[72].mxu0 }
 0x4a2   :  { %v2886_v25 = vadd.f32 %v2579_v58, %v2529_v21  ;;  %v3708_v27 = vpop.f32.mrb[73].mxu0 }
 0x4a3   :  { %v2582_v40 = vpop.f32.mrb[74].mxu0 }
 0x4a4   :  { %v2887_v37 = vadd.f32 %v2582_v40, %v2532_v61  ;;  %v3709_v49 = vpop.f32.mrb[75].mxu0 }
 0x4a6   :  { %v2629_v43 = vpop.f32.mrb[72].mxu1 }
 0x4a7   :  { %v2888_v42 = vadd.f32 %v2886_v25, %v2629_v43  ;;  %v3714_v29 = vpop.f32.mrb[73].mxu1 }
 0x4a8   :  { %v2632_v28 = vpop.f32.mrb[74].mxu1 }
 0x4a9   :  { %v2889_v30 = vadd.f32 %v2887_v37, %v2632_v28  ;;  %v3715_v4 = vpop.f32.mrb[75].mxu1 }
 0x4aa   :  { %v2679_v52 = vpop.f32.mrb[76].mxu0 }
 0x4ab   :  { %v2890_v34 = vadd.f32 %v2888_v42, %v2679_v52  ;;  %v3720_v47 = vpop.f32.mrb[77].mxu0 }
 0x4ac   :  { %v2682_v2 = vpop.f32.mrb[78].mxu0 }
 0x4ad   :  { %v2891_v24 = vadd.f32 %v2889_v30, %v2682_v2  ;;  %v3721_v8 = vpop.f32.mrb[79].mxu0 }
 0x4ae   :  { %v2729_v22 = vpop.f32.mrb[76].mxu1 }
 0x4af   :  { %v2892_v54 = vadd.f32 %v2890_v34, %v2729_v22  ;;  %v3726_v38 = vpop.f32.mrb[77].mxu1 }
 0x4b0   :  { %v2732_v33 = vpop.f32.mrb[78].mxu1 }
 0x4b1   :  { %v2893_v5 = vadd.f32 %v2891_v24, %v2732_v33  ;;  %v3727_v60 = vpop.f32.mrb[79].mxu1 }
 0x4b2   :  { %v2779_v20 = vpop.f32.mrb[80].mxu0 }
 0x4b3   :  { %v2894_v6 = vadd.f32 %v2892_v54, %v2779_v20  ;;  %v3732_v48 = vpop.f32.mrb[81].mxu0 }
 0x4b4   :  { %v2782_v56 = vpop.f32.mrb[82].mxu0 }
 0x4b5   :  { %v2895_v18 = vadd.f32 %v2893_v5, %v2782_v56  ;;  %v3733_v3 = vpop.f32.mrb[83].mxu0 }
 0x4b7   :  { %v2829_v44 = vpop.f32.mrb[80].mxu1 }
 0x4b8   :  { %v2896_v53 = vadd.f32 %v2894_v6, %v2829_v44  ;;  %v3738_v46 = vpop.f32.mrb[81].mxu1 }
 0x4b9   :  { %v2832_v11 = vpop.f32.mrb[82].mxu1 }
 0x4ba   :  { %v2897_v50 = vadd.f32 %v2895_v18, %v2832_v11  ;;  %v3739_v35 = vpop.f32.mrb[83].mxu1 }
 0x4be   :  { %v2879_v59 = vpop.f32.mrb[84].mxu0 }
 0x4bf   :  { %v2898_v62 = vadd.f32 %v2896_v53, %v2879_v59  ;;  %v3744_v23 = vpop.f32.mrb[85].mxu0 }
 0x4c0   :  { %v2882_v36 = vpop.f32.mrb[86].mxu0 }
 0x4c1   :  { %v3273_v19 = vadd.f32 %v3379_v41, %v2898_v62  ;;  %v2899_v7 = vadd.f32 %v2897_v50, %v2882_v36  ;;  %v3745_v51 = vpop.f32.mrb[87].mxu0 }
 0x4c2   :  { %v2937_v63 = vpop.f32.mrb[84].mxu1 }
 0x4c3   :  { %v3750_v55 = vpop.f32.mrb[85].mxu1  ;;  %3277 = vst [vmem:[#allocation2] sm:$0xff] %v3273_v19  ;;  %v3274_v1 = vadd.f32 %v3379_v41, %v2899_v7 }
 0x4c4   :  { %v2940_v15 = vpop.f32.mrb[86].mxu1 }
 0x4c5   :  { %v3751_v10 = vpop.f32.mrb[87].mxu1  ;;  %3278 = vst [vmem:[#allocation2 + $0x8] sm:$0xff] %v3274_v1 }
 0x4ca   :  { %v2981_v9 = vpop.f32.mrb[88].mxu0 }
 0x4cb   :  { %v3252_v16 = vadd.f32 %v2981_v9, %v2937_v63  ;;  %v3756_v26 = vpop.f32.mrb[89].mxu0 }
 0x4cc   :  { %v2984_v32 = vpop.f32.mrb[90].mxu0 }
 0x4cd   :  { %v3253_v12 = vadd.f32 %v2984_v32, %v2940_v15  ;;  %v3757_v14 = vpop.f32.mrb[91].mxu0 }
 0x4ce   :  { %v3025_v45 = vpop.f32.mrb[88].mxu1 }
 0x4cf   :  { %v3254_v13 = vadd.f32 %v3252_v16, %v3025_v45  ;;  %v3762_v31 = vpop.f32.mrb[89].mxu1 }
 0x4d0   :  { %v3028_v39 = vpop.f32.mrb[90].mxu1 }
 0x4d1   :  { %v3255_v17 = vadd.f32 %v3253_v12, %v3028_v39  ;;  %v3763_v21 = vpop.f32.mrb[91].mxu1 }
 0x4d2   :  { %v3069_v57 = vpop.f32.mrb[92].mxu0 }
 0x4d3   :  { %v3256_v61 = vadd.f32 %v3254_v13, %v3069_v57  ;;  %v3768_v0 = vpop.f32.mrb[93].mxu0 }
 0x4d4   :  { %v3072_v58 = vpop.f32.mrb[94].mxu0 }
 0x4d5   :  { %v3257_v25 = vadd.f32 %v3255_v17, %v3072_v58  ;;  %v3769_v27 = vpop.f32.mrb[95].mxu0 }
 0x4d6   :  { %v3113_v40 = vpop.f32.mrb[92].mxu1 }
 0x4d7   :  { %v3258_v37 = vadd.f32 %v3256_v61, %v3113_v40  ;;  %v3774_v49 = vpop.f32.mrb[93].mxu1 }
 0x4d8   :  { %v3116_v43 = vpop.f32.mrb[94].mxu1 }
 0x4d9   :  { %v3259_v42 = vadd.f32 %v3257_v25, %v3116_v43  ;;  %v3775_v29 = vpop.f32.mrb[95].mxu1 }
 0x4da   :  { %v3157_v28 = vpop.f32.mrb[96].mxu0 }
 0x4db   :  { %v3260_v30 = vadd.f32 %v3258_v37, %v3157_v28  ;;  %v3780_v4 = vpop.f32.mrb[97].mxu0 }
 0x4dc   :  { %v3160_v52 = vpop.f32.mrb[98].mxu0 }
 0x4dd   :  { %v3261_v34 = vadd.f32 %v3259_v42, %v3160_v52  ;;  %v3781_v47 = vpop.f32.mrb[99].mxu0 }
 0x4de   :  { %v3201_v2 = vpop.f32.mrb[96].mxu1 }
 0x4df   :  { %v3262_v24 = vadd.f32 %v3260_v30, %v3201_v2  ;;  %v3786_v8 = vpop.f32.mrb[97].mxu1 }
 0x4e0   :  { %v3204_v22 = vpop.f32.mrb[98].mxu1 }
 0x4e1   :  { %v3263_v54 = vadd.f32 %v3261_v34, %v3204_v22  ;;  %v3787_v38 = vpop.f32.mrb[99].mxu1 }
 0x4e2   :  { %v3245_v33 = vpop.f32.mrb[100].mxu0 }
 0x4e3   :  { %v3264_v5 = vadd.f32 %v3262_v24, %v3245_v33  ;;  %v3792_v60 = vpop.f32.mrb[101].mxu0 }
 0x4e4   :  { %v3248_v20 = vpop.f32.mrb[102].mxu0 }
 0x4e5   :  { %v3275_v6 = vadd.f32 %v3379_v41, %v3264_v5  ;;  %v3265_v48 = vadd.f32 %v3263_v54, %v3248_v20  ;;  %v3793_v56 = vpop.f32.mrb[103].mxu0 }
 0x4e7   :  { %3279 = vst [vmem:[#allocation2 + $0x10] sm:$0xff] %v3275_v6  ;;  %v3276_v18 = vadd.f32 %v3379_v41, %v3265_v48 }
 0x4e9   :  { %3280 = vst [vmem:[#allocation2 + $0x18] sm:$0xff] %v3276_v18 }
 0x4ea   :  { %4198 = shalt.err (!%p4195_p4)
}
 0x4eb   :  { %s4199_s20 = scalar_lea.hbm %s4951_s5, 512 }
 0x4ec   :  { %p4200_p5 = scmp.ne.s32.totalorder %s4951_s5, %s4199_s20  ;;  %p4203_p6 = scmp.lt.u32.totalorder %s4199_s20, %s4951_s5 }
 0x4ee   :  { %p4205_p7 = pnand %p4203_p6, %p4200_p5 }
 0x4f0   :  { %4208 = shalt.err (!%p4205_p7)
}
 0x4f1   :  { %s4222_s24 = smov 128   ;;  %s4223_s25 = smov 8  }
 0x4f2   :  { %3292 = dma.vmem_to_hbm [thread:$0]  %s3287_s18, 512, %s4951_s5, [#allocation3], %s4222_s24, %s4222_s24, %s4223_s25  }
 0x4f3   :  { %4209 = dma.done.wait [#allocation3], 512  }
 0x4f4   :  { %4210 = vsyncadd [#allocation3], 4294966784 }
 0x4f5   :  { %3296 = vsyncpa [#allocation3], 1 }

</bundles_post_ra>
